<compile_context>
chip_gen: v6e
topology: v6e:2x2x1
jax: 0.10.0
libtpu: 0.0.40
codegen_flags: <defaults>
</compile_context>

<pallas_src>
import functools

import jax
import jax.numpy as jnp
from jax import lax
from jax.experimental import pallas as pl
from jax.experimental.pallas import tpu as pltpu


# --------------------------------------------------------------------------
# Fused kernel: conv_in block + block1 + 'add' pooling + MLP head for a chunk
# of G graphs per grid step.
# --------------------------------------------------------------------------
def _fused_forward_kernel(x_ref, adj_ref, mask_ref, w_ref, b_ref, out_ref,
                          *, hid, fpad, ncls):
    f32 = jnp.float32
    bf16 = jnp.bfloat16

    x = x_ref[...]          # (G, N, Fpad) f32  (features >= Fin are zero pad)
    adj = adj_ref[...]      # (G, N, N)    f32
    mask = mask_ref[...]    # (G, N, 1)    f32
    g, n, _ = x.shape
    gn = g * n
    mask_flat = mask.reshape(gn, 1)

    # ---- DenseGCNConv adjacency preamble, ONCE per chunk, shared by all four
    # convs: diag(A)=1 (self loops), degree clamp, full symmetric norm.
    row = lax.broadcasted_iota(jnp.int32, (n, n), 0)
    col = lax.broadcasted_iota(jnp.int32, (n, n), 1)
    adj_l = jnp.where((row == col)[None], f32(1.0), adj)              # (G,N,N)
    deg = jnp.maximum(jnp.sum(adj_l, axis=-1, keepdims=True), 1.0)    # (G,N,1)
    dis = lax.rsqrt(deg)
    adj_n = (dis * adj_l * jnp.swapaxes(dis, -1, -2)).astype(bf16)    # bf16 once

    # ---- static views into the stacked slabs (weights already bf16 from the
    # wrapper; every row offset is a multiple of 16 -> tile-aligned slices).
    offs = [0]

    def wseg(rows):
        o = offs[0]
        offs[0] = o + rows
        return w_ref[pl.ds(o, rows), :]

    a_w1 = wseg(fpad)
    a_w2 = wseg(hid)
    a_wla = wseg(hid)
    a_wlb = wseg(hid)
    b_w1 = wseg(hid)
    b_w2 = wseg(hid)
    b_wla = wseg(hid)
    b_wlb = wseg(hid)
    h_w1a = wseg(hid)
    h_w1b = wseg(hid)
    h_w2 = wseg(hid)                      # (H, H); columns >= C are zero pad

    def bseg(i):                          # (1, H) f32 bias rows
        return b_ref[pl.ds(i, 1), :]

    a_b1, a_b2, a_bl = bseg(0), bseg(1), bseg(2)
    b_b1, b_b2, b_bl = bseg(3), bseg(4), bseg(5)
    h_b1, h_b2 = bseg(6), bseg(7)         # h_b2 columns >= C are zero pad

    def adj_mm(h_flat):
        # per-graph D^-1/2 (A+I) D^-1/2 @ h, chunk-batched on the MXU.
        h3 = h_flat.reshape(g, n, h_flat.shape[-1]).astype(bf16)
        out = jnp.einsum('gij,gjf->gif', adj_n, h3,
                         preferred_element_type=f32)
        return out.reshape(gn, out.shape[-1])

    def gcn(h, w, b):
        # relu(( A_norm @ (h @ W) + b ) * mask)
        t = jnp.dot(h.astype(bf16), w, preferred_element_type=f32)
        t = adj_mm(t)
        return jnp.maximum((t + b) * mask_flat, 0.0)

    def jk_pool(h1, h2, wla, wlb, bl):
        # JumpingKnowledge('cat') + Linear(2H->H): cat([h1,h2])@W = h1@Wa+h2@Wb
        out = jnp.dot(h1.astype(bf16), wla, preferred_element_type=f32)
        out = out + jnp.dot(h2.astype(bf16), wlb, preferred_element_type=f32)
        out = jnp.maximum(out + bl, 0.0) * mask_flat            # (G*N, H)
        pooled = jnp.sum(out.reshape(g, n, hid), axis=1)        # 'add' pool
        return out, pooled

    # ---- block 0 (conv_in).  conv1 has Fin < H: apply the adjacency on the
    # narrow feature width first -> (A_norm @ x) @ W1 (same math, fewer MACs).
    ax = adj_mm(x.reshape(gn, fpad))
    h1 = jnp.maximum(
        (jnp.dot(ax.astype(bf16), a_w1, preferred_element_type=f32) + a_b1)
        * mask_flat, 0.0)
    h2 = gcn(h1, a_w2, a_b2)
    x1, p0 = jk_pool(h1, h2, a_wla, a_wlb, a_bl)

    # ---- block 1 (node-level output stays in VMEM; only its pool is used).
    h1 = gcn(x1, b_w1, b_b1)
    h2 = gcn(h1, b_w2, b_b2)
    _, p1 = jk_pool(h1, h2, b_wla, b_wlb, b_bl)

    # ---- head: BN(eval) folded into lin1 (wrapper), lin1 -> relu,
    # dropout (eval => identity), lin2 -> softmax.
    # TODO(synk): dropout is identity here (eval-mode forward).
    h = jnp.dot(p0.astype(bf16), h_w1a, preferred_element_type=f32)
    h = h + jnp.dot(p1.astype(bf16), h_w1b, preferred_element_type=f32)
    h = jnp.maximum(h + h_b1, 0.0)                               # (G, H)
    logits = (jnp.dot(h.astype(bf16), h_w2, preferred_element_type=f32)
              + h_b2)[:, :ncls]                                  # (G, C)
    m = jnp.max(logits, axis=-1, keepdims=True)
    e = jnp.exp(logits - m)
    probs = e * pl.reciprocal(jnp.sum(e, axis=-1, keepdims=True), approx=True)
    out_ref[0] = probs                                           # (G, C)


# --------------------------------------------------------------------------
# Full BaseModel forward (dense path, num_layers=2, readout=True, pool='add')
# --------------------------------------------------------------------------
def base_model_forward(x, adj, mask, params, num_classes, graphs_per_step=None):
    B, N, Fin = x.shape
    H = params["conv_in"]["w2"].shape[-1]
    C = num_classes
    assert C <= H, "head lin2 is packed into the H-wide weight slab"

    # Graphs per grid step: amortize per-step overhead while keeping >= 2 grid
    # steps so both v7x TensorCores get work (no effect on v5e/v6e).
    if graphs_per_step is None:
        graphs_per_step = B // 2 if (B >= 2 and B % 2 == 0) else 1
    G = graphs_per_step
    assert B % G == 0
    S = B // G

    # Pad node features to a 16-row boundary so every segment of the stacked
    # bf16 weight slab stays tile-aligned.
    Fpad = max(16, -(-Fin // 16) * 16)
    x_p = jnp.pad(x.astype(jnp.float32), ((0, 0), (0, 0), (0, Fpad - Fin)))
    mask3 = mask.reshape(B, N, 1).astype(jnp.float32)
    adj = adj.astype(jnp.float32)

    ca, cb, hd = params["conv_in"], params["block1"], params["head"]

    # Fold eval-mode BatchNorm1d into the first head linear:
    #   BN(f) = gamma * (f - mean) * rsqrt(var + eps) + beta
    #   BN(f) @ W1 + b1 == f @ (s[:,None]*W1) + (b1 + (beta - mean*s) @ W1)
    eps = float(hd.get("bn_eps", 1e-5))          # must match torch BN eps
    bn_scale = hd["bn_gamma"] * lax.rsqrt(hd["bn_var"] + eps)          # (2H,)
    w1_f = hd["w1"] * bn_scale[:, None]                                # (2H,H)
    b1_f = (hd["b1"].reshape(1, -1)
            + ((hd["bn_beta"] - hd["bn_mean"] * bn_scale) @ hd["w1"]).reshape(1, -1))

    # Collapse ALL weights into one bf16 slab (single double-buffered DMA
    # stream instead of 19) and all biases into one small f32 slab.
    def pad_rows(w, rows):
        return jnp.pad(w, ((0, rows - w.shape[0]), (0, 0)))

    w_slab = jnp.concatenate([
        pad_rows(ca["w1"], Fpad),                    # conv_in conv1 (Fpad, H)
        ca["w2"],                                    # conv_in conv2 (H, H)
        ca["wl"][:H], ca["wl"][H:2 * H],             # conv_in JK lin halves
        cb["w1"], cb["w2"],                          # block1 convs
        cb["wl"][:H], cb["wl"][H:2 * H],             # block1 JK lin halves
        w1_f[:H], w1_f[H:2 * H],                     # head lin1 halves (BN folded)
        jnp.pad(hd["w2"], ((0, 0), (0, H - C))),     # head lin2, cols padded to H
    ], axis=0).astype(jnp.bfloat16)

    def brow(b):
        b = b.reshape(1, -1)
        return jnp.pad(b, ((0, 0), (0, H - b.shape[-1])))

    b_slab = jnp.concatenate([
        brow(ca["b1"]), brow(ca["b2"]), brow(ca["bl"]),
        brow(cb["b1"]), brow(cb["b2"]), brow(cb["bl"]),
        brow(b1_f), brow(hd["b2"]),
    ], axis=0).astype(jnp.float32)                   # (8, H)

    kernel = functools.partial(_fused_forward_kernel, hid=H, fpad=Fpad, ncls=C)

    graph3 = lambda shape: pl.BlockSpec(shape, lambda s: (s, 0, 0))
    whole2 = lambda shape: pl.BlockSpec(shape, lambda s: (0, 0))

    probs = pl.pallas_call(
        kernel,
        out_shape=jax.ShapeDtypeStruct((S, G, C), jnp.float32),
        grid_spec=pltpu.PrefetchScalarGridSpec(
            num_scalar_prefetch=0,
            grid=(S,),
            in_specs=[
                graph3((G, N, Fpad)),                # x (padded features)
                graph3((G, N, N)),                   # adj
                graph3((G, N, 1)),                   # mask
                whole2(w_slab.shape),                # all weights, bf16
                whole2(b_slab.shape),                # all biases, f32
            ],
            out_specs=pl.BlockSpec((1, G, C), lambda s: (s, 0, 0)),
        ),
        compiler_params=pltpu.CompilerParams(
            dimension_semantics=("parallel",)),
    )(x_p, adj, mask3, w_slab, b_slab)
    return probs.reshape(B, C)


# --------------------------------------------------------------------------
# Pure-JAX f32 reference of the same forward (for correctness check).
# --------------------------------------------------------------------------
def _reference_forward(x, adj, mask, params, num_classes):
    N = x.shape[1]
    mask3 = mask[:, :, None].astype(jnp.float32)
    eye = jnp.eye(N, dtype=jnp.float32)
    adj_l = jnp.where(eye[None] > 0, 1.0, adj)
    deg = jnp.maximum(jnp.sum(adj_l, axis=-1, keepdims=True), 1.0)
    dis = deg ** -0.5
    adj_n = dis * adj_l * jnp.swapaxes(dis, -1, -2)

    def gcn(h, w, b):
        out = jnp.einsum('gij,gjf->gif', adj_n, h @ w) + b
        return jnp.maximum(out * mask3, 0.0)

    def block(h, p):
        h1 = gcn(h, p["w1"], p["b1"])
        h2 = gcn(h1, p["w2"], p["b2"])
        out = jnp.concatenate([h1, h2], axis=-1) @ p["wl"] + p["bl"]
        return jnp.maximum(out, 0.0) * mask3

    x1 = block(x, params["conv_in"])
    p0 = jnp.sum(x1, axis=1)
    x2 = block(x1, params["block1"])
    p1 = jnp.sum(x2, axis=1)
    f = jnp.concatenate([p0, p1], axis=-1)
    hd = params["head"]
    eps = float(hd.get("bn_eps", 1e-5))
    f = ((f - hd["bn_mean"]) * hd["bn_gamma"] / jnp.sqrt(hd["bn_var"] + eps)
         + hd["bn_beta"])
    h = jnp.maximum(f @ hd["w1"] + hd["b1"], 0.0)
    logits = h @ hd["w2"] + hd["b2"]
    return jax.nn.softmax(logits, axis=-1)


def _init_block_params(key, fin, hidden):
    ks = jax.random.split(key, 6)
    s = 0.1
    return {
        "w1": s * jax.random.normal(ks[0], (fin, hidden), jnp.float32),
        "b1": s * jax.random.normal(ks[1], (1, hidden), jnp.float32),
        "w2": s * jax.random.normal(ks[2], (hidden, hidden), jnp.float32),
        "b2": s * jax.random.normal(ks[3], (1, hidden), jnp.float32),
        "wl": s * jax.random.normal(ks[4], (2 * hidden, hidden), jnp.float32),
        "bl": s * jax.random.normal(ks[5], (1, hidden), jnp.float32),
    }


if __name__ == "__main__":
    key = jax.random.PRNGKey(0)
    B, N, FIN, HIDDEN, NUM_CLASSES = 8, 16, 4, 32, 4

    k_x, k_adj, k_p0, k_p1, k_h = jax.random.split(key, 5)

    # Node features, random symmetric dense adjacency, per-graph node counts.
    x = jax.random.normal(k_x, (B, N, FIN), jnp.float32)
    adj = (jax.random.uniform(k_adj, (B, N, N)) > 0.7).astype(jnp.float32)
    adj = jnp.maximum(adj, jnp.swapaxes(adj, 1, 2))
    counts = jnp.array([16, 12, 16, 10, 15, 8, 14, 16])
    mask = (jnp.arange(N)[None, :] < counts[:, None]).astype(jnp.float32)
    # Zero out padded rows/cols/features (ToDense would produce zeros there).
    x = x * mask[:, :, None]
    adj = adj * mask[:, :, None] * mask[:, None, :]

    hks = jax.random.split(k_h, 8)
    out_dim = 2 * HIDDEN  # len(gps)=1, num_layers=2, readout=True
    params = {
        "conv_in": _init_block_params(k_p0, FIN, HIDDEN),
        "block1": _init_block_params(k_p1, HIDDEN, HIDDEN),
        "head": {
            # Non-trivial eval-mode BatchNorm1d stats, folded into lin1.
            "bn_gamma": 1.0 + 0.1 * jax.random.normal(hks[0], (out_dim,), jnp.float32),
            "bn_beta": 0.1 * jax.random.normal(hks[1], (out_dim,), jnp.float32),
            "bn_mean": 0.1 * jax.random.normal(hks[2], (out_dim,), jnp.float32),
            "bn_var": 0.5 + jax.random.uniform(hks[3], (out_dim,), jnp.float32),
            "bn_eps": 1e-5,
            "w1": 0.1 * jax.random.normal(hks[4], (out_dim, HIDDEN), jnp.float32),
            "b1": 0.1 * jax.random.normal(hks[5], (1, HIDDEN), jnp.float32),
            "w2": 0.1 * jax.random.normal(hks[6], (HIDDEN, NUM_CLASSES), jnp.float32),
            "b2": 0.1 * jax.random.normal(hks[7], (1, NUM_CLASSES), jnp.float32),
        },
    }

    probs = base_model_forward(x, adj, mask, params, NUM_CLASSES)
    probs = jax.block_until_ready(probs)
    ref = _reference_forward(x, adj, mask, params, NUM_CLASSES)

    assert probs.shape == (B, NUM_CLASSES)
    assert bool(jnp.all(jnp.isfinite(probs)))
    # approx reciprocal in the softmax => sums are 1 to ~1e-3.
    assert bool(jnp.allclose(jnp.sum(probs, axis=-1), 1.0, atol=1e-2))
    max_err = float(jnp.max(jnp.abs(probs - ref)))
    assert max_err < 5e-2, f"max |kernel - reference| = {max_err}"
    print("KERNEL_OK")
</pallas_src>

<mosaic_0001>
module attributes {stable_mosaic.version = 11 : i64} {
  func.func @_fused_forward_kernel(%arg0: i32, %arg1: memref<4x16x16xf32, #tpu.memory_space<vmem>>, %arg2: memref<4x16x16xf32, #tpu.memory_space<vmem>>, %arg3: memref<4x16x1xf32, #tpu.memory_space<vmem>>, %arg4: memref<336x32xbf16, #tpu.memory_space<vmem>>, %arg5: memref<8x32xf32, #tpu.memory_space<vmem>>, %arg6: memref<1x4x4xf32, #tpu.memory_space<vmem>>) attributes {dimension_semantics = [#tpu.dimension_semantics<parallel>], iteration_bounds = array<i64: 2>, scalar_prefetch = 0 : i64, scratch_operands = 0 : i64, tpu.core_type = #tpu.core_type<tc>, window_params = [{transform_indices = @transform_0, window_bounds = array<i64: 4, 16, 16>}, {transform_indices = @transform_1, window_bounds = array<i64: 4, 16, 16>}, {transform_indices = @transform_2, window_bounds = array<i64: 4, 16, 1>}, {pipeline_mode = #tpu.pipeline_mode<synchronous>, transform_indices = @transform_3, window_bounds = array<i64: 336, 32>}, {pipeline_mode = #tpu.pipeline_mode<synchronous>, transform_indices = @transform_4, window_bounds = array<i64: 8, 32>}, {transform_indices = @transform_5, window_bounds = array<i64: 1, 4, 4>}]} {
    %c0 = arith.constant 0 : index
    %c0_0 = arith.constant 0 : index
    %c0_1 = arith.constant 0 : index
    %0 = vector.load %arg1[%c0, %c0_0, %c0_1] : memref<4x16x16xf32, #tpu.memory_space<vmem>>, vector<4x16x16xf32>
    %c0_2 = arith.constant 0 : index
    %c0_3 = arith.constant 0 : index
    %c0_4 = arith.constant 0 : index
    %1 = vector.load %arg2[%c0_2, %c0_3, %c0_4] : memref<4x16x16xf32, #tpu.memory_space<vmem>>, vector<4x16x16xf32>
    %c0_5 = arith.constant 0 : index
    %c0_6 = arith.constant 0 : index
    %c0_7 = arith.constant 0 : index
    %2 = vector.load %arg3[%c0_5, %c0_6, %c0_7] : memref<4x16x1xf32, #tpu.memory_space<vmem>>, vector<4x16x1xf32>
    %3 = vector.shape_cast %2 : vector<4x16x1xf32> to vector<64x1xf32>
    %4 = tpu.iota {dimensions = array<i32: 0>} : vector<16x16xi32>
    %5 = tpu.iota {dimensions = array<i32: 1>} : vector<16x16xi32>
    %6 = arith.cmpi eq, %4, %5 : vector<16x16xi32>
    %7 = vector.shape_cast %6 : vector<16x16xi1> to vector<1x16x16xi1>
    %cst = arith.constant 1.000000e+00 : f32
    %8 = vector.shape_cast %7 : vector<1x16x16xi1> to vector<1x16x16xi1>
    %9 = vector.broadcast %8 : vector<1x16x16xi1> to vector<4x16x16xi1>
    %10 = vector.broadcast %cst : f32 to vector<4x16x16xf32>
    %11 = arith.select %9, %10, %1 : vector<4x16x16xi1>, vector<4x16x16xf32>
    %cst_8 = arith.constant dense<0.000000e+00> : vector<4x16xf32>
    %12 = vector.multi_reduction <add>, %11, %cst_8 [2] : vector<4x16x16xf32> to vector<4x16xf32>
    %13 = vector.shape_cast %12 : vector<4x16xf32> to vector<4x16x1xf32>
    %cst_9 = arith.constant 1.000000e+00 : f32
    %14 = vector.broadcast %cst_9 : f32 to vector<4x16x1xf32>
    %15 = arith.maximumf %13, %14 : vector<4x16x1xf32>
    %16 = math.rsqrt %15 : vector<4x16x1xf32>
    %17 = vector.broadcast %16 : vector<4x16x1xf32> to vector<4x16x16xf32>
    %18 = arith.mulf %17, %11 : vector<4x16x16xf32>
    %19 = tpu.transpose %16, [0, 2, 1] : vector<4x16x1xf32> -> vector<4x1x16xf32>
    %20 = vector.broadcast %19 : vector<4x1x16xf32> to vector<4x16x16xf32>
    %21 = arith.mulf %18, %20 : vector<4x16x16xf32>
    %22 = arith.truncf %21 : vector<4x16x16xf32> to vector<4x16x16xbf16>
    %c0_10 = arith.constant 0 : index
    %c0_11 = arith.constant 0 : index
    %23 = vector.load %arg4[%c0_10, %c0_11] : memref<336x32xbf16, #tpu.memory_space<vmem>>, vector<16x32xbf16>
    %c16 = arith.constant 16 : index
    %c0_12 = arith.constant 0 : index
    %24 = vector.load %arg4[%c16, %c0_12] : memref<336x32xbf16, #tpu.memory_space<vmem>>, vector<32x32xbf16>
    %c48 = arith.constant 48 : index
    %c0_13 = arith.constant 0 : index
    %25 = vector.load %arg4[%c48, %c0_13] : memref<336x32xbf16, #tpu.memory_space<vmem>>, vector<32x32xbf16>
    %c80 = arith.constant 80 : index
    %c0_14 = arith.constant 0 : index
    %26 = vector.load %arg4[%c80, %c0_14] : memref<336x32xbf16, #tpu.memory_space<vmem>>, vector<32x32xbf16>
    %c112 = arith.constant 112 : index
    %c0_15 = arith.constant 0 : index
    %27 = vector.load %arg4[%c112, %c0_15] : memref<336x32xbf16, #tpu.memory_space<vmem>>, vector<32x32xbf16>
    %c144 = arith.constant 144 : index
    %c0_16 = arith.constant 0 : index
    %28 = vector.load %arg4[%c144, %c0_16] : memref<336x32xbf16, #tpu.memory_space<vmem>>, vector<32x32xbf16>
    %c176 = arith.constant 176 : index
    %c0_17 = arith.constant 0 : index
    %29 = vector.load %arg4[%c176, %c0_17] : memref<336x32xbf16, #tpu.memory_space<vmem>>, vector<32x32xbf16>
    %c208 = arith.constant 208 : index
    %c0_18 = arith.constant 0 : index
    %30 = vector.load %arg4[%c208, %c0_18] : memref<336x32xbf16, #tpu.memory_space<vmem>>, vector<32x32xbf16>
    %c240 = arith.constant 240 : index
    %c0_19 = arith.constant 0 : index
    %31 = vector.load %arg4[%c240, %c0_19] : memref<336x32xbf16, #tpu.memory_space<vmem>>, vector<32x32xbf16>
    %c272 = arith.constant 272 : index
    %c0_20 = arith.constant 0 : index
    %32 = vector.load %arg4[%c272, %c0_20] : memref<336x32xbf16, #tpu.memory_space<vmem>>, vector<32x32xbf16>
    %c304 = arith.constant 304 : index
    %c0_21 = arith.constant 0 : index
    %33 = vector.load %arg4[%c304, %c0_21] : memref<336x32xbf16, #tpu.memory_space<vmem>>, vector<32x32xbf16>
    %c0_22 = arith.constant 0 : index
    %c0_23 = arith.constant 0 : index
    %34 = vector.load %arg5[%c0_22, %c0_23] : memref<8x32xf32, #tpu.memory_space<vmem>>, vector<1x32xf32>
    %c1 = arith.constant 1 : index
    %c0_24 = arith.constant 0 : index
    %35 = vector.load %arg5[%c1, %c0_24] : memref<8x32xf32, #tpu.memory_space<vmem>>, vector<1x32xf32>
    %c2 = arith.constant 2 : index
    %c0_25 = arith.constant 0 : index
    %36 = vector.load %arg5[%c2, %c0_25] : memref<8x32xf32, #tpu.memory_space<vmem>>, vector<1x32xf32>
    %c3 = arith.constant 3 : index
    %c0_26 = arith.constant 0 : index
    %37 = vector.load %arg5[%c3, %c0_26] : memref<8x32xf32, #tpu.memory_space<vmem>>, vector<1x32xf32>
    %c4 = arith.constant 4 : index
    %c0_27 = arith.constant 0 : index
    %38 = vector.load %arg5[%c4, %c0_27] : memref<8x32xf32, #tpu.memory_space<vmem>>, vector<1x32xf32>
    %c5 = arith.constant 5 : index
    %c0_28 = arith.constant 0 : index
    %39 = vector.load %arg5[%c5, %c0_28] : memref<8x32xf32, #tpu.memory_space<vmem>>, vector<1x32xf32>
    %c6 = arith.constant 6 : index
    %c0_29 = arith.constant 0 : index
    %40 = vector.load %arg5[%c6, %c0_29] : memref<8x32xf32, #tpu.memory_space<vmem>>, vector<1x32xf32>
    %c7 = arith.constant 7 : index
    %c0_30 = arith.constant 0 : index
    %41 = vector.load %arg5[%c7, %c0_30] : memref<8x32xf32, #tpu.memory_space<vmem>>, vector<1x32xf32>
    %42 = vector.shape_cast %0 : vector<4x16x16xf32> to vector<64x16xf32>
    %43 = vector.shape_cast %42 : vector<64x16xf32> to vector<4x16x16xf32>
    %44 = arith.truncf %43 : vector<4x16x16xf32> to vector<4x16x16xbf16>
    "tpu.trace_start"() <{level = 10 : i32, message = "gij,gjf->gif"}> : () -> ()
    %cst_31 = arith.constant dense<0.000000e+00> : vector<4x16x16xf32>
    %45 = tpu.matmul %22, %44, %cst_31 {dimension_numbers = #tpu.dot_dimension_numbers<[2], [1], [1], [2], [0, 0, 0, 1, 1, 2], [0], [0]>} : vector<4x16x16xbf16>, vector<4x16x16xbf16>, vector<4x16x16xf32> -> vector<4x16x16xf32>
    "tpu.trace_stop"() : () -> ()
    %46 = vector.shape_cast %45 : vector<4x16x16xf32> to vector<64x16xf32>
    %47 = arith.truncf %46 : vector<64x16xf32> to vector<64x16xbf16>
    %cst_32 = arith.constant dense<0.000000e+00> : vector<64x32xf32>
    %48 = tpu.matmul %47, %23, %cst_32 {dimension_numbers = #tpu.dot_dimension_numbers<[1], [0], [0], [1], [0, 0, 1, 1], [], []>} : vector<64x16xbf16>, vector<16x32xbf16>, vector<64x32xf32> -> vector<64x32xf32>
    %49 = vector.broadcast %34 : vector<1x32xf32> to vector<64x32xf32>
    %50 = arith.addf %48, %49 : vector<64x32xf32>
    %51 = vector.broadcast %3 : vector<64x1xf32> to vector<64x32xf32>
    %52 = arith.mulf %50, %51 : vector<64x32xf32>
    %cst_33 = arith.constant 0.000000e+00 : f32
    %53 = vector.broadcast %cst_33 : f32 to vector<64x32xf32>
    %54 = arith.maximumf %52, %53 : vector<64x32xf32>
    %55 = arith.truncf %54 : vector<64x32xf32> to vector<64x32xbf16>
    %cst_34 = arith.constant dense<0.000000e+00> : vector<64x32xf32>
    %56 = tpu.matmul %55, %24, %cst_34 {dimension_numbers = #tpu.dot_dimension_numbers<[1], [0], [0], [1], [0, 0, 1, 1], [], []>} : vector<64x32xbf16>, vector<32x32xbf16>, vector<64x32xf32> -> vector<64x32xf32>
    %57 = vector.shape_cast %56 : vector<64x32xf32> to vector<4x16x32xf32>
    %58 = arith.truncf %57 : vector<4x16x32xf32> to vector<4x16x32xbf16>
    "tpu.trace_start"() <{level = 10 : i32, message = "gij,gjf->gif"}> : () -> ()
    %cst_35 = arith.constant dense<0.000000e+00> : vector<4x16x32xf32>
    %59 = tpu.matmul %22, %58, %cst_35 {dimension_numbers = #tpu.dot_dimension_numbers<[2], [1], [1], [2], [0, 0, 0, 1, 1, 2], [0], [0]>} : vector<4x16x16xbf16>, vector<4x16x32xbf16>, vector<4x16x32xf32> -> vector<4x16x32xf32>
    "tpu.trace_stop"() : () -> ()
    %60 = vector.shape_cast %59 : vector<4x16x32xf32> to vector<64x32xf32>
    %61 = vector.broadcast %35 : vector<1x32xf32> to vector<64x32xf32>
    %62 = arith.addf %60, %61 : vector<64x32xf32>
    %63 = vector.broadcast %3 : vector<64x1xf32> to vector<64x32xf32>
    %64 = arith.mulf %62, %63 : vector<64x32xf32>
    %cst_36 = arith.constant 0.000000e+00 : f32
    %65 = vector.broadcast %cst_36 : f32 to vector<64x32xf32>
    %66 = arith.maximumf %64, %65 : vector<64x32xf32>
    %67 = arith.truncf %54 : vector<64x32xf32> to vector<64x32xbf16>
    %cst_37 = arith.constant dense<0.000000e+00> : vector<64x32xf32>
    %68 = tpu.matmul %67, %25, %cst_37 {dimension_numbers = #tpu.dot_dimension_numbers<[1], [0], [0], [1], [0, 0, 1, 1], [], []>} : vector<64x32xbf16>, vector<32x32xbf16>, vector<64x32xf32> -> vector<64x32xf32>
    %69 = arith.truncf %66 : vector<64x32xf32> to vector<64x32xbf16>
    %cst_38 = arith.constant dense<0.000000e+00> : vector<64x32xf32>
    %70 = tpu.matmul %69, %26, %cst_38 {dimension_numbers = #tpu.dot_dimension_numbers<[1], [0], [0], [1], [0, 0, 1, 1], [], []>} : vector<64x32xbf16>, vector<32x32xbf16>, vector<64x32xf32> -> vector<64x32xf32>
    %71 = arith.addf %68, %70 : vector<64x32xf32>
    %72 = vector.broadcast %36 : vector<1x32xf32> to vector<64x32xf32>
    %73 = arith.addf %71, %72 : vector<64x32xf32>
    %cst_39 = arith.constant 0.000000e+00 : f32
    %74 = vector.broadcast %cst_39 : f32 to vector<64x32xf32>
    %75 = arith.maximumf %73, %74 : vector<64x32xf32>
    %76 = vector.broadcast %3 : vector<64x1xf32> to vector<64x32xf32>
    %77 = arith.mulf %75, %76 : vector<64x32xf32>
    %78 = vector.shape_cast %77 : vector<64x32xf32> to vector<4x16x32xf32>
    %cst_40 = arith.constant dense<0.000000e+00> : vector<4x32xf32>
    %79 = vector.multi_reduction <add>, %78, %cst_40 [1] : vector<4x16x32xf32> to vector<4x32xf32>
    %80 = arith.truncf %77 : vector<64x32xf32> to vector<64x32xbf16>
    %cst_41 = arith.constant dense<0.000000e+00> : vector<64x32xf32>
    %81 = tpu.matmul %80, %27, %cst_41 {dimension_numbers = #tpu.dot_dimension_numbers<[1], [0], [0], [1], [0, 0, 1, 1], [], []>} : vector<64x32xbf16>, vector<32x32xbf16>, vector<64x32xf32> -> vector<64x32xf32>
    %82 = vector.shape_cast %81 : vector<64x32xf32> to vector<4x16x32xf32>
    %83 = arith.truncf %82 : vector<4x16x32xf32> to vector<4x16x32xbf16>
    "tpu.trace_start"() <{level = 10 : i32, message = "gij,gjf->gif"}> : () -> ()
    %cst_42 = arith.constant dense<0.000000e+00> : vector<4x16x32xf32>
    %84 = tpu.matmul %22, %83, %cst_42 {dimension_numbers = #tpu.dot_dimension_numbers<[2], [1], [1], [2], [0, 0, 0, 1, 1, 2], [0], [0]>} : vector<4x16x16xbf16>, vector<4x16x32xbf16>, vector<4x16x32xf32> -> vector<4x16x32xf32>
    "tpu.trace_stop"() : () -> ()
    %85 = vector.shape_cast %84 : vector<4x16x32xf32> to vector<64x32xf32>
    %86 = vector.broadcast %37 : vector<1x32xf32> to vector<64x32xf32>
    %87 = arith.addf %85, %86 : vector<64x32xf32>
    %88 = vector.broadcast %3 : vector<64x1xf32> to vector<64x32xf32>
    %89 = arith.mulf %87, %88 : vector<64x32xf32>
    %cst_43 = arith.constant 0.000000e+00 : f32
    %90 = vector.broadcast %cst_43 : f32 to vector<64x32xf32>
    %91 = arith.maximumf %89, %90 : vector<64x32xf32>
    %92 = arith.truncf %91 : vector<64x32xf32> to vector<64x32xbf16>
    %cst_44 = arith.constant dense<0.000000e+00> : vector<64x32xf32>
    %93 = tpu.matmul %92, %28, %cst_44 {dimension_numbers = #tpu.dot_dimension_numbers<[1], [0], [0], [1], [0, 0, 1, 1], [], []>} : vector<64x32xbf16>, vector<32x32xbf16>, vector<64x32xf32> -> vector<64x32xf32>
    %94 = vector.shape_cast %93 : vector<64x32xf32> to vector<4x16x32xf32>
    %95 = arith.truncf %94 : vector<4x16x32xf32> to vector<4x16x32xbf16>
    "tpu.trace_start"() <{level = 10 : i32, message = "gij,gjf->gif"}> : () -> ()
    %cst_45 = arith.constant dense<0.000000e+00> : vector<4x16x32xf32>
    %96 = tpu.matmul %22, %95, %cst_45 {dimension_numbers = #tpu.dot_dimension_numbers<[2], [1], [1], [2], [0, 0, 0, 1, 1, 2], [0], [0]>} : vector<4x16x16xbf16>, vector<4x16x32xbf16>, vector<4x16x32xf32> -> vector<4x16x32xf32>
    "tpu.trace_stop"() : () -> ()
    %97 = vector.shape_cast %96 : vector<4x16x32xf32> to vector<64x32xf32>
    %98 = vector.broadcast %38 : vector<1x32xf32> to vector<64x32xf32>
    %99 = arith.addf %97, %98 : vector<64x32xf32>
    %100 = vector.broadcast %3 : vector<64x1xf32> to vector<64x32xf32>
    %101 = arith.mulf %99, %100 : vector<64x32xf32>
    %cst_46 = arith.constant 0.000000e+00 : f32
    %102 = vector.broadcast %cst_46 : f32 to vector<64x32xf32>
    %103 = arith.maximumf %101, %102 : vector<64x32xf32>
    %104 = arith.truncf %91 : vector<64x32xf32> to vector<64x32xbf16>
    %cst_47 = arith.constant dense<0.000000e+00> : vector<64x32xf32>
    %105 = tpu.matmul %104, %29, %cst_47 {dimension_numbers = #tpu.dot_dimension_numbers<[1], [0], [0], [1], [0, 0, 1, 1], [], []>} : vector<64x32xbf16>, vector<32x32xbf16>, vector<64x32xf32> -> vector<64x32xf32>
    %106 = arith.truncf %103 : vector<64x32xf32> to vector<64x32xbf16>
    %cst_48 = arith.constant dense<0.000000e+00> : vector<64x32xf32>
    %107 = tpu.matmul %106, %30, %cst_48 {dimension_numbers = #tpu.dot_dimension_numbers<[1], [0], [0], [1], [0, 0, 1, 1], [], []>} : vector<64x32xbf16>, vector<32x32xbf16>, vector<64x32xf32> -> vector<64x32xf32>
    %108 = arith.addf %105, %107 : vector<64x32xf32>
    %109 = vector.broadcast %39 : vector<1x32xf32> to vector<64x32xf32>
    %110 = arith.addf %108, %109 : vector<64x32xf32>
    %cst_49 = arith.constant 0.000000e+00 : f32
    %111 = vector.broadcast %cst_49 : f32 to vector<64x32xf32>
    %112 = arith.maximumf %110, %111 : vector<64x32xf32>
    %113 = vector.broadcast %3 : vector<64x1xf32> to vector<64x32xf32>
    %114 = arith.mulf %112, %113 : vector<64x32xf32>
    %115 = vector.shape_cast %114 : vector<64x32xf32> to vector<4x16x32xf32>
    %cst_50 = arith.constant dense<0.000000e+00> : vector<4x32xf32>
    %116 = vector.multi_reduction <add>, %115, %cst_50 [1] : vector<4x16x32xf32> to vector<4x32xf32>
    %117 = arith.truncf %79 : vector<4x32xf32> to vector<4x32xbf16>
    %cst_51 = arith.constant dense<0.000000e+00> : vector<4x32xf32>
    %118 = tpu.matmul %117, %31, %cst_51 {dimension_numbers = #tpu.dot_dimension_numbers<[1], [0], [0], [1], [0, 0, 1, 1], [], []>} : vector<4x32xbf16>, vector<32x32xbf16>, vector<4x32xf32> -> vector<4x32xf32>
    %119 = arith.truncf %116 : vector<4x32xf32> to vector<4x32xbf16>
    %cst_52 = arith.constant dense<0.000000e+00> : vector<4x32xf32>
    %120 = tpu.matmul %119, %32, %cst_52 {dimension_numbers = #tpu.dot_dimension_numbers<[1], [0], [0], [1], [0, 0, 1, 1], [], []>} : vector<4x32xbf16>, vector<32x32xbf16>, vector<4x32xf32> -> vector<4x32xf32>
    %121 = arith.addf %118, %120 : vector<4x32xf32>
    %122 = vector.broadcast %40 : vector<1x32xf32> to vector<4x32xf32>
    %123 = arith.addf %121, %122 : vector<4x32xf32>
    %cst_53 = arith.constant 0.000000e+00 : f32
    %124 = vector.broadcast %cst_53 : f32 to vector<4x32xf32>
    %125 = arith.maximumf %123, %124 : vector<4x32xf32>
    %126 = arith.truncf %125 : vector<4x32xf32> to vector<4x32xbf16>
    %cst_54 = arith.constant dense<0.000000e+00> : vector<4x32xf32>
    %127 = tpu.matmul %126, %33, %cst_54 {dimension_numbers = #tpu.dot_dimension_numbers<[1], [0], [0], [1], [0, 0, 1, 1], [], []>} : vector<4x32xbf16>, vector<32x32xbf16>, vector<4x32xf32> -> vector<4x32xf32>
    %128 = vector.broadcast %41 : vector<1x32xf32> to vector<4x32xf32>
    %129 = arith.addf %127, %128 : vector<4x32xf32>
    %130 = vector.extract_strided_slice %129 {offsets = [0, 0], sizes = [4, 4], strides = [1, 1]} : vector<4x32xf32> to vector<4x4xf32>
    %cst_55 = arith.constant dense<0xFF800000> : vector<4xf32>
    %131 = vector.multi_reduction <maximumf>, %130, %cst_55 [1] : vector<4x4xf32> to vector<4xf32>
    %132 = vector.shape_cast %131 : vector<4xf32> to vector<4x1xf32>
    %133 = vector.broadcast %132 : vector<4x1xf32> to vector<4x4xf32>
    %134 = arith.subf %130, %133 : vector<4x4xf32>
    %135 = math.exp %134 : vector<4x4xf32>
    %cst_56 = arith.constant dense<0.000000e+00> : vector<4xf32>
    %136 = vector.multi_reduction <add>, %135, %cst_56 [1] : vector<4x4xf32> to vector<4xf32>
    %137 = vector.shape_cast %136 : vector<4xf32> to vector<4x1xf32>
    %138 = tpu.reciprocal %137 {approx = true} : vector<4x1xf32> -> vector<4x1xf32>
    %139 = vector.broadcast %138 : vector<4x1xf32> to vector<4x4xf32>
    %140 = arith.mulf %135, %139 : vector<4x4xf32>
    %c0_57 = arith.constant 0 : index
    %c0_58 = arith.constant 0 : index
    %c0_59 = arith.constant 0 : index
    %141 = vector.load %arg6[%c0_57, %c0_58, %c0_59] : memref<1x4x4xf32, #tpu.memory_space<vmem>>, vector<1x4x4xf32>
    %142 = vector.shape_cast %141 : vector<1x4x4xf32> to vector<4x4xf32>
    %143 = vector.shape_cast %140 : vector<4x4xf32> to vector<1x4x4xf32>
    tpu.vector_store %arg6[%c0_57, %c0_58, %c0_59], %143 {strides = array<i32>} : memref<1x4x4xf32, #tpu.memory_space<vmem>>, vector<1x4x4xf32>,
    return
  }
  func.func @transform_0(%arg0: i32) -> (i32, i32, i32) {
    %c0_i32 = arith.constant 0 : i32
    %c0_i32_0 = arith.constant 0 : i32
    %c0_i32_1 = arith.constant 0 : i32
    return %arg0, %c0_i32, %c0_i32_0 : i32, i32, i32
  }
  func.func @transform_1(%arg0: i32) -> (i32, i32, i32) {
    %c0_i32 = arith.constant 0 : i32
    %c0_i32_0 = arith.constant 0 : i32
    %c0_i32_1 = arith.constant 0 : i32
    return %arg0, %c0_i32, %c0_i32_0 : i32, i32, i32
  }
  func.func @transform_2(%arg0: i32) -> (i32, i32, i32) {
    %c0_i32 = arith.constant 0 : i32
    %c0_i32_0 = arith.constant 0 : i32
    %c0_i32_1 = arith.constant 0 : i32
    return %arg0, %c0_i32, %c0_i32_0 : i32, i32, i32
  }
  func.func @transform_3(%arg0: i32) -> (i32, i32) {
    %c0_i32 = arith.constant 0 : i32
    %c0_i32_0 = arith.constant 0 : i32
    %c0_i32_1 = arith.constant 0 : i32
    return %c0_i32, %c0_i32_0 : i32, i32
  }
  func.func @transform_4(%arg0: i32) -> (i32, i32) {
    %c0_i32 = arith.constant 0 : i32
    %c0_i32_0 = arith.constant 0 : i32
    %c0_i32_1 = arith.constant 0 : i32
    return %c0_i32, %c0_i32_0 : i32, i32
  }
  func.func @transform_5(%arg0: i32) -> (i32, i32, i32) {
    %c0_i32 = arith.constant 0 : i32
    %c0_i32_0 = arith.constant 0 : i32
    %c0_i32_1 = arith.constant 0 : i32
    return %arg0, %c0_i32, %c0_i32_0 : i32, i32, i32
  }
}

</mosaic_0001>

<bundles_post_ra>
// kernel: tpu_custom_call.1
= control target key start
LH: loop header
LB: loop body
LE: loop exit
PB: predicated region body
PF: predicated region fallthrough
CT: control target
= control target key end

     0   :  { %10 = vsyncpa [#allocation3], 0  ;;  %s3627_s0 = inlined_call_operand.vmem [shape: f32[8,16,16], index: 0, kind: input, shape index: {}]   ;;  %s3628_s1 = inlined_call_operand.vmem [shape: f32[8,16,16], index: 1, kind: input, shape index: {}]   ;;  %s3629_s2 = inlined_call_operand.vmem [shape: f32[8,16,1], index: 2, kind: input, shape index: {}]   ;;  %s3630_s3 = inlined_call_operand.vmem [shape: bf16[336,32], index: 3, kind: input, shape index: {}]   ;;  %s3631_s4 = inlined_call_operand.vmem [shape: f32[8,32], index: 4, kind: input, shape index: {}]   ;;  %s3632_s5 = inlined_call_operand.hbm [shape: f32[2,4,4], index: 5, kind: output, shape index: {}]  }
   0x1   :  { %12 = vsyncpa [#allocation3 + $0x1], 0  ;;  %s3145_s18 = smov 0   ;;  %s3147_s19 = smov 0  }
   0x2   :  { %s3149_s20 = smov 0   ;;  %s3151_s21 = smov 0  }
   0x3 LB: > { %s3166_s22 = sadd.s32 4294967295, %s3109_s21   ;;  %s2561_s23 = sadd.s32 4294967294, %s3109_s21   ;;  %s3109_s21 = sphi %s3151_s21, %s3638_s21   ;;  %s3105_s20 = sphi %s3149_s20, %s3637_s20   ;;  %s3101_s19 = sphi %s3147_s19, %s3636_s19   ;;  %s3097_s18 = sphi %s3145_s18, %s3635_s18  }
   0x4   : > { %s3170_s24 = sadd.s32 1, %s3109_s21   ;;  %s145_s25 = sadd.s32 1, %s3105_s20 }
   0x5   : > { %s142_s26 = ssub.s32 %s3109_s21, %s3170_s24  ;;  %p155_p0 = scmp.ne.s32.totalorder %s3105_s20, %s3101_s19 }
   0x6   : > { %p143_p1 = scmp.eq.s32.totalorder %s142_s26, 0  ;;  %p156_p2 = scmp.eq.s32.totalorder %s3166_s22, 1 }
   0x7   : > { %p161_p3 = scmp.ne.s32.totalorder %s3101_s19, %s3097_s18  ;;  %p162_p4 = scmp.eq.s32.totalorder %s2561_s23, 1 }
   0x8   : > { %s3181_s27 = scalar_select %p143_p1, %s3105_s20, %s145_s25  }
   0x9   : > { %p3183_p5 = por %p156_p2, %p155_p0  ;;  %p3187_p6 = por %p162_p4, %p161_p3 }
   0xa   : > { %p2564_p7 = scmp.ge.s32.totalorder %s3109_s21, 1  ;;  %p216_p8 = scmp.lt.s32.totalorder %s3109_s21, 3 }
   0xc   : > { %p217_p9 = pnand %p2564_p7, %p216_p8 }
   0xd   : > { %s2566_s30 = sshll.u32 (!%p217_p9), %s3166_s22, 2  ;;  %s254_s10 = sand.u32 (!%p217_p9), 1, %s3101_s19  }
   0xe   : > { %220 = sbr.rel (%p217_p9) target bundleno = 3135 (0xc3f), region = 40  ;;  %p258_p10 = scmp.lt.s32.totalorder (!%p217_p9), %s2566_s30, 7 }
   0xf   : > { %s2565_s11 = sshll.u32 (!%p217_p9), %s254_s10, 2  ;;  %s2465_s23 = scalar_lea.sflag (!%p217_p9), [#allocation3], %s254_s10 }
  0x10   : > { %s256_s13 = scalar_lea.vmem (!%p217_p9), [#allocation2], %s2565_s11  ;;  %s3114_s26 = smov (!%p217_p9), [#allocation2]  }
  0x11   : > { %s2478_s14 = sshll.u32 (!%p217_p9), %s256_s13, 4  ;;  %s2479_s14 = int_to_ptr.vmem [resolvable:$true] %s2478_s14 }
  0x12   : > { %s3049_s25 = scalar_lea.vmem (!%p217_p9), %s2479_s14, 64 }
  0x13   : > { %v303_v0 = vlaneseq  ;;  %s3640_s30 = smov (!%p258_p10, %s2566_s30), 7  ;;  %vm322_vm1 = vcmask 130048   ;;  %v3111_v48 = vmov 0.0   ;;  %vm3112_vm3 = vmmov 0   ;;  %p3050_p11 = scmp.ne.s32.totalorder %s2479_s14, %s3049_s25 }
  0x14   : > { %s3197_s6 = sshll.u32 %s3640_s30, 4  ;;  %2750 = vmatprep.subr.bf16.mxu0 %v3111_v48  ;;  %2756 = vmatprep.subr.bf16.mxu1 %v3111_v48  ;;  %vm920_vm4 = vcmask 261120   ;;  %vm2256_vm5 = vcmask 1041409   ;;  %vm2258_vm6 = vcmask 1042434   ;;  %vm2260_vm7 = vcmask 1043459   ;;  %s3053_s30 = sshll.u32 %s3114_s26, 4  ;;  %s3054_s30 = int_to_ptr.vmem [resolvable:$false] %s3053_s30 }
  0x15   : > { %v3194_v1 = vshrl.u32 %v303_v0, 7  ;;  %v307_v2 = vand.u32 127, %v303_v0  ;;  %s269_s9 = scalar_lea.vmem %s3628_s1, %s3197_s6  ;;  %s3252_s12 = scalar_lea.vmem %s3627_s0, %s3197_s6  ;;  %2752 = vmatprep.mubr.msk.bf16.mxu0 %vm3112_vm3, %v3111_v48  ;;  %2758 = vmatprep.mubr.msk.bf16.mxu1 %vm3112_vm3, %v3111_v48  ;;  %vm2451_vm8 = vcmask 27648  }
  0x16   : > { %v287_v4 = vld [vmem:[%s269_s9] sm:$0xff]  ;;  %v288_v5 = vld [vmem:[%s269_s9 + $0x8] sm:$0xff]  ;;  %v289_v6 = vld [vmem:[%s269_s9 + $0x10] sm:$0xff]  ;;  %s276_s17 = scalar_lea.vmem %s3629_s2, %s3197_s6  ;;  %p3051_p12 = pnand %p3050_p11, %p3183_p5 }
  0x17   : > { %v305_v3 = vadd.s32 8, %v3194_v1  ;;  %vm308_vm0 = vcmp.eq.s32.totalorder %v3194_v1, %v307_v2  ;;  %v290_v10 = vld [vmem:[%s269_s9 + $0x18] sm:$0xff]  ;;  %v291_v11 = vld [vmem:[%s269_s9 + $0x20] sm:$0xff]  ;;  %v293_v12 = vld [vmem:[%s269_s9 + $0x30] sm:$0xff]  ;;  %v501_v59 = vsub.s32 0, %v3194_v1  ;;  %p3056_p0 = scmp.lt.s32.totalorder %s2479_s14, %s3054_s30 }
  0x18   : > { %v3206_v7 = vsel %vm308_vm0, 1.0, %v287_v4  ;;  %v3213_v9 = vsel %vm308_vm0, 1.0, %v289_v6  ;;  %v292_v16 = vld [vmem:[%s269_s9 + $0x28] sm:$0xff]  ;;  %v294_v17 = vld [vmem:[%s269_s9 + $0x38] sm:$0xff]  ;;  %v3226_v19 = vsel %vm308_vm0, 1.0, %v291_v11  ;;  %v3230_v20 = vsel %vm308_vm0, 1.0, %v293_v12  ;;  %p3052_p13 = pneg %p3051_p12 }
  0x19   : > { %vm309_vm2 = vcmp.eq.s32.totalorder %v305_v3, %v307_v2  ;;  %v323_v13 = vsel %vm322_vm1, %v3206_v7, 0.0  ;;  %v329_v18 = vsel %vm322_vm1, %v3213_v9, 0.0  ;;  %v335_v23 = vsel %vm322_vm1, %v3226_v19, 0.0  ;;  %v279_v44 = vld [vmem:[%s3252_s12] sm:$0xff]  ;;  %v280_v45 = vld [vmem:[%s3252_s12 + $0x8] sm:$0xff]  ;;  %v281_v50 = vld [vmem:[%s3252_s12 + $0x10] sm:$0xff] }
  0x1a   : > { %v3209_v8 = vsel %vm309_vm2, 1.0, %v288_v5  ;;  %v3220_v15 = vsel %vm309_vm2, 1.0, %v290_v10  ;;  %324 = vadd.xlane.f32.xlu0 %v323_v13  ;;  %v3233_v21 = vsel %vm309_vm2, 1.0, %v292_v16  ;;  %v341_v24 = vsel %vm322_vm1, %v3230_v20, 0.0  ;;  %v282_v51 = vld [vmem:[%s3252_s12 + $0x18] sm:$0xff]  ;;  %v283_v0 = vld [vmem:[%s3252_s12 + $0x20] sm:$0xff] }
  0x1b   : > { %v326_v14 = vsel %vm322_vm1, %v3209_v8, 0.0  ;;  %v332_v22 = vsel %vm322_vm1, %v3220_v15, 0.0  ;;  %v3242_v25 = vsel %vm309_vm2, 1.0, %v294_v17  ;;  %v338_v26 = vsel %vm322_vm1, %v3233_v21, 0.0  ;;  %v284_v2 = vld [vmem:[%s3252_s12 + $0x28] sm:$0xff]  ;;  %v285_v13 = vld [vmem:[%s3252_s12 + $0x30] sm:$0xff] }
  0x1c   : > { %327 = vadd.xlane.f32.xlu1 %v326_v14  ;;  %v344_v27 = vsel %vm322_vm1, %v3242_v25, 0.0  ;;  %v577_v46 = vpack.c.bf16 %v280_v45, %v279_v44  ;;  %v578_v52 = vpack.c.bf16 %v282_v51, %v281_v50  ;;  %v579_v6 = vpack.c.bf16 %v284_v2, %v283_v0  ;;  %v286_v14 = vld [vmem:[%s3252_s12 + $0x38] sm:$0xff]  ;;  %s2656_s12 = sshll.u32 %s3166_s22, 6  ;;  %s3055_s22 = scalar_lea.vmem %s3054_s30, 128 }
  0x1d   : > { %v580_v17 = vpack.c.bf16 %v286_v14, %v285_v13  ;;  %p3057_p1 = scmp.lt.s32.totalorder %s3055_s22, %s3049_s25 }
  0x1e   : > { %330 = vadd.xlane.f32.xlu0 %v329_v18  ;;  %2751 = vmatpush3.bf16.msra.mxu0 %v577_v46 }
  0x1f   : > { %2762 = vmatprep.subr.bf16.mxu0 %v3111_v48  ;;  %2757 = vmatpush3.bf16.msra.mxu1 %v578_v52  ;;  %p3058_p2 = por %p3057_p1, %p3056_p0 }
  0x20   : > { %333 = vadd.xlane.f32.xlu1 %v332_v22  ;;  %2768 = vmatprep.subr.bf16.mxu1 %v3111_v48 }
  0x21   : > { %p3059_p3 = pnand %p3058_p2, %p3052_p13 }
  0x22   : > { %336 = vadd.xlane.f32.xlu0 %v335_v23 }
  0x24   : > { %342 = vadd.xlane.f32.xlu1 %v341_v24 }
  0x26   : > { %339 = vadd.xlane.f32.xlu0 %v338_v26 }
  0x28   : > { %345 = vadd.xlane.f32.xlu1 %v344_v27 }
  0xa3   : > { %v325_v28 = vpop.xlane.xlu0 %324 }
  0xa4   : > { %v347_v30 = vmax.f32 %v325_v28, 1.0 }
  0xa5   : > { %v328_v29 = vpop.xlane.xlu1 %327 }
  0xa6   : > { %v348_v31 = vmax.f32 %v328_v29, 1.0  ;;  %3029 = vrsqrt.f32 %v347_v30 }
  0xa7   : > { %v331_v32 = vpop.xlane.xlu0 %330 }
  0xa8   : > { %3031 = vrsqrt.f32 %v348_v31  ;;  %v349_v34 = vmax.f32 %v331_v32, 1.0  ;;  %v3008_v32 = vld [vmem:[%s3630_s3] sm:$0xff]  }
  0xa9   : > { %v334_v33 = vpop.xlane.xlu1 %333 }
  0xaa   : > { %v350_v35 = vmax.f32 %v334_v33, 1.0  ;;  %3033 = vrsqrt.f32 %v349_v34  ;;  %v295_v33 = vld [vmem:[%s276_s17] sm:$0xff]  ;;  %v297_v34 = vld [vmem:[%s276_s17 + $0x10] sm:$0xff] }
  0xab   : > { %v337_v36 = vpop.xlane.xlu0 %336 }
  0xac   : > { %3035 = vrsqrt.f32 %v350_v35  ;;  %v351_v38 = vmax.f32 %v337_v36, 1.0  ;;  %v299_v35 = vld [vmem:[%s276_s17 + $0x20] sm:$0xff]  ;;  %v298_v36 = vld [vmem:[%s276_s17 + $0x18] sm:$0xff] }
  0xad   : > { %v343_v37 = vpop.xlane.xlu1 %342 }
  0xae   : > { %v353_v39 = vmax.f32 %v343_v37, 1.0  ;;  %3037 = vrsqrt.f32 %v351_v38  ;;  %v301_v37 = vld [vmem:[%s276_s17 + $0x30] sm:$0xff]  ;;  %v300_v38 = vld [vmem:[%s276_s17 + $0x28] sm:$0xff] }
  0xaf   : > { %v340_v40 = vpop.xlane.xlu0 %339 }
  0xb0   : > { %3039 = vrsqrt.f32 %v353_v39  ;;  %v352_v42 = vmax.f32 %v340_v40, 1.0  ;;  %v302_v39 = vld [vmem:[%s276_s17 + $0x38] sm:$0xff] }
  0xb1   : > { %v346_v41 = vpop.xlane.xlu1 %345 }
  0xb2   : > { %v354_v43 = vmax.f32 %v346_v41, 1.0  ;;  %3041 = vrsqrt.f32 %v352_v42 }
  0xb3   : > { %v3030_v47 = vpop.eup %3029 }
  0xb4   : > { %3043 = vrsqrt.f32 %v354_v43  ;;  %371 = vxpose.xlu0.b32.start [1/2] (short) (narrow) %v3030_v47, 8  ;;  %v363_v61 = vmul.f32 %v3030_v47, %v3206_v7 }
  0xb5   : > { %v3032_v49 = vpop.eup %3031 }
  0xb6   : > { %v364_v62 = vmul.f32 %v3032_v49, %v3209_v8 }
  0xb7   : > { %v3034_v53 = vpop.eup %3033 }
  0xb8   : > { %372 = vxpose.xlu0.b32.end [2/2] (short) (narrow) %v3032_v49, 8  ;;  %403 = vxpose.xlu1.b32.start [1/2] (short) (narrow) %v3034_v53, 8  ;;  %v365_v12 = vmul.f32 %v3034_v53, %v3213_v9 }
  0xb9   : > { %v3036_v54 = vpop.eup %3035 }
  0xba   : > { %v366_v11 = vmul.f32 %v3036_v54, %v3220_v15 }
  0xbb   : > { %v3038_v55 = vpop.eup %3037 }
  0xbc   : > { %404 = vxpose.xlu1.b32.end [2/2] (short) (narrow) %v3036_v54, 8  ;;  %435 = vxpose.xlu0.b32.start [1/2] (short) (narrow) %v3038_v55, 8  ;;  %v367_v15 = vmul.f32 %v3038_v55, %v3226_v19 }
  0xbd   : > { %v3040_v56 = vpop.eup %3039 }
  0xbe   : > { %v369_v28 = vmul.f32 %v3040_v56, %v3230_v20  ;;  %v3113_v20 = vmov 0  }
  0xbf   : > { %v3042_v57 = vpop.eup %3041 }
  0xc0   : > { %467 = vxpose.xlu1.b32.start [1/2] (short) (narrow) %v3040_v56, 8  ;;  %436 = vxpose.xlu0.b32.end [2/2] (short) (narrow) %v3042_v57, 8  ;;  %v368_v9 = vmul.f32 %v3042_v57, %v3233_v21 }
  0xc1   : > { %v3044_v58 = vpop.eup %3043 }
  0xc2   : > { %v370_v19 = vmul.f32 %v3044_v58, %v3242_v25  ;;  %v296_v25 = vld [vmem:[%s276_s17 + $0x8] sm:$0xff]  ;;  %s2476_s17 = scalar_lea.hbm %s3632_s5, %s2656_s12 }
  0xc4   : > { %468 = vxpose.xlu1.b32.end [2/2] (short) (narrow) %v3044_v58, 8 }
  0xe2   : > { %3007 = vset.pattern.permute.xlu1 %v3113_v20 }
  0xe3   : > { %855 = vperm.xlu1 %3007, %v296_v25  }
  0xe7   : > { %860 = vperm.xlu1 %3007, %v297_v34  }
  0xe9   : > { %3006 = vset.pattern.permute.xlu0 %v3113_v20 }
  0xea   : > { %850 = vperm.xlu0 %3006, %v295_v33  }
  0xeb   : > { %865 = vperm.xlu1 %3007, %v298_v36  }
  0xee   : > { %870 = vperm.xlu0 %3006, %v299_v35  }
  0xef   : > { %875 = vperm.xlu1 %3007, %v300_v38  }
  0xf2   : > { %880 = vperm.xlu0 %3006, %v301_v37  }
  0xf3   : > { %885 = vperm.xlu1 %3007, %v302_v39  }
 0x130   : > { %v387_v60 = vpop.trf.xlu0 }
 0x131   : > { %v502_v63 = vrot.slane %v387_v60, %v501_v59 }
 0x133   : > { %v515_v3 = vmul.f32 %v502_v63, %v363_v61  ;;  %v516_v4 = vmul.f32 %v502_v63, %v364_v62  ;;  %v3009_v61 = vld [vmem:[%s3630_s3 + $0x10] sm:$0xff]   ;;  %v3010_v62 = vld [vmem:[%s3630_s3 + $0x8] sm:$0xff]  }
 0x134   : > { %v419_v5 = vpop.trf.xlu1 }
 0x135   : > { %v3271_v10 = vpack.c.bf16 %v516_v4, %v515_v3  ;;  %v506_v1 = vrot.slane %v419_v5, %v501_v59  ;;  %v2579_v3 = vld [vmem:[%s3631_s4] ss:$0 sm:$0xff] }
 0x137   : > { %v517_v16 = vmul.f32 %v506_v1, %v365_v12  ;;  %v518_v7 = vmul.f32 %v506_v1, %v366_v11  ;;  %2753 = vmatmul.mubr.msk.bf16.vlgmr.msra.gmra.mxu0 %vm322_vm1, %v3271_v10 }
 0x138   : > { %v451_v8 = vpop.trf.xlu0  ;;  %2763 = vmatpush3.bf16.msra.mxu0 %v579_v6  ;;  %2764 = vmatprep.mubr.msk.bf16.mxu0 %vm3112_vm3, %v3111_v48 }
 0x139   : > { %v3281_v18 = vpack.c.bf16 %v518_v7, %v517_v16  ;;  %v510_v22 = vrot.slane %v451_v8, %v501_v59  ;;  %2774 = vmatprep.subr.bf16.mxu0 %v3008_v32 }
 0x13b   : > { %v519_v23 = vmul.f32 %v510_v22, %v367_v15  ;;  %v520_v24 = vmul.f32 %v510_v22, %v368_v9  ;;  %2759 = vmatmul.mubr.msk.bf16.vlgmr.msra.gmra.mxu1 %vm322_vm1, %v3281_v18 }
 0x13c   : > { %v483_v26 = vpop.trf.xlu1  ;;  %2769 = vmatpush3.bf16.msra.mxu1 %v580_v17  ;;  %2770 = vmatprep.mubr.msk.bf16.mxu1 %vm3112_vm3, %v3111_v48 }
 0x13d   : > { %v3289_v27 = vpack.c.bf16 %v520_v24, %v519_v23  ;;  %v514_v29 = vrot.slane %v483_v26, %v501_v59  ;;  %2784 = vmatprep.subr.bf16.mxu1 %v3009_v61 }
 0x13f   : > { %v521_v21 = vmul.f32 %v514_v29, %v369_v28  ;;  %v522_v30 = vmul.f32 %v514_v29, %v370_v19  ;;  %2765 = vmatmul.mubr.msk.bf16.vlgmr.msra.gmra.mxu0 %vm322_vm1, %v3289_v27 }
 0x140   : > { %2775 = vmatpush3.bf16.msra.mxu0 %v3008_v32 }
 0x141   : > { %v3295_v31 = vpack.c.bf16 %v522_v30, %v521_v21  ;;  %2796 = vmatprep.subr.bf16.mxu0 %v3111_v48 }
 0x143   : > { %2771 = vmatmul.mubr.msk.bf16.vlgmr.msra.gmra.mxu1 %vm322_vm1, %v3295_v31 }
 0x144   : > { %2785 = vmatpush3.bf16.msra.mxu1 %v3009_v61 }
 0x145   : > { %2786 = vmatprep.subr.bf16.mxu1 %v3010_v62 }
 0x148   : > { %2787 = vmatpush3.bf16.msra.mxu1 %v3010_v62  ;;  %v3012_v62 = vld [vmem:[%s3630_s3 + $0x18] sm:$0xff]  }
 0x149   : > { %2802 = vmatprep.subr.bf16.mxu1 %v3111_v48 }
 0x15e   : > { %v3320_v63 = vpop.permute.xlu1 %855 }
 0x162   : > { %v3322_v0 = vpop.permute.xlu1 %860 }
 0x165   : > { %v3329_v6 = vpop.permute.xlu0 %850 }
 0x166   : > { %v3327_v4 = vpop.permute.xlu1 %865 }
 0x169   : > { %v3336_v22 = vpop.permute.xlu0 %870 }
 0x16a   : > { %v3333_v17 = vpop.permute.xlu1 %875 }
 0x16d   : > { %v3341_v36 = vpop.permute.xlu0 %880 }
 0x16e   : > { %v3339_v33 = vpop.permute.xlu1 %885 }
 0x1f7   : > { %v618_v40 = vpop.f32.mrf.mxu0 }
 0x1f9   : > { %v2754_v41 = vpop.f32.mrf.mxu0 }
 0x1fb   : > { %v621_v42 = vpop.f32.mrf.mxu0  ;;  %v662_v43 = vpop.f32.mrf.mxu1 }
 0x1fc   : > { %v757_v44 = vpack.c.bf16 %v621_v42, %v618_v40 }
 0x1fd   : > { %v2755_v45 = vpop.f32.mrf.mxu0  ;;  %v2760_v46 = vpop.f32.mrf.mxu1 }
 0x1fe   : > { %2776 = vmatprep.mubr.msk.bf16.mxu0 %vm322_vm1, %v757_v44 }
 0x1ff   : > { %v665_v47 = vpop.f32.mrf.mxu1  ;;  %v706_v49 = vpop.f32.mrf.mxu0 }
 0x200   : > { %v758_v50 = vpack.c.bf16 %v665_v47, %v662_v43 }
 0x201   : > { %v2761_v51 = vpop.f32.mrf.mxu1  ;;  %v2766_v52 = vpop.f32.mrf.mxu0 }
 0x202   : > { %2777 = vmatmul.mubr.msk.bf16.vlgmr.msra.gmra.mxu0 %vm322_vm1, %v758_v50 }
 0x203   : > { %v709_v53 = vpop.f32.mrf.mxu0  ;;  %v750_v54 = vpop.f32.mrf.mxu1 }
 0x204   : > { %v759_v55 = vpack.c.bf16 %v709_v53, %v706_v49 }
 0x205   : > { %v2767_v56 = vpop.f32.mrf.mxu0  ;;  %v2772_v57 = vpop.f32.mrf.mxu1 }
 0x206   : > { %2780 = vmatprep.mubr.msk.bf16.mxu0 %vm322_vm1, %v759_v55 }
 0x207   : > { %v753_v58 = vpop.f32.mrf.mxu1 }
 0x208   : > { %v760_v59 = vpack.c.bf16 %v753_v58, %v750_v54  ;;  %v3011_v58 = vld [vmem:[%s3630_s3 + $0x20] sm:$0xff]  }
 0x209   : > { %v2773_v60 = vpop.f32.mrf.mxu1 }
 0x20a   : > { %2781 = vmatmul.mubr.msk.bf16.gmra.mxu0 %vm322_vm1, %v760_v59 }
 0x20b   : > { %2798 = vmatprep.mubr.msk.bf16.mxu0 %vm3112_vm3, %v3111_v48 }
 0x2c2   : > { %v2778_v2 = vpop.f32.mrf.mxu0 }
 0x2c3   : > { %v826_v12 = vadd.f32 %v2778_v2, %v2579_v3  ;;  %v3013_v2 = vld [vmem:[%s3630_s3 + $0x30] sm:$0xff]  }
 0x2c4   : > { %v817_v5 = vpop.f32.mrf.mxu0 }
 0x2c5   : > { %v818_v11 = vadd.f32 %v2579_v3, %v817_v5  ;;  %v890_v15 = vmul.f32 %v3322_v0, %v826_v12 }
 0x2c6   : > { %v2779_v1 = vpop.f32.mrf.mxu0 }
 0x2c7   : > { %v829_v13 = vadd.f32 %v2779_v1, %v2579_v3  ;;  %v888_v16 = vmul.f32 %v3329_v6, %v818_v11  ;;  %v898_v21 = vmax.f32 %v890_v15, 0.0  ;;  %v2595_v11 = vld [vmem:[%s3631_s4 + $0x1] ss:$0 sm:$0xff] }
 0x2c8   : > { %v820_v14 = vpop.f32.mrf.mxu0 }
 0x2c9   : > { %v891_v7 = vmul.f32 %v3327_v4, %v829_v13  ;;  %v821_v8 = vadd.f32 %v2579_v3, %v820_v14  ;;  %v896_v28 = vmax.f32 %v888_v16, 0.0 }
 0x2ca   : > { %v2782_v9 = vpop.f32.mrf.mxu0 }
 0x2cb   : > { %v889_v23 = vmul.f32 %v3320_v63, %v821_v8  ;;  %v899_v24 = vmax.f32 %v891_v7, 0.0  ;;  %v842_v30 = vadd.f32 %v2782_v9, %v2579_v3 }
 0x2cc   : > { %v833_v26 = vpop.f32.mrf.mxu0 }
 0x2cd   : > { %v897_v19 = vmax.f32 %v889_v23, 0.0  ;;  %v834_v29 = vadd.f32 %v2579_v3, %v833_v26  ;;  %v905_v34 = vpack.c.bf16 %v899_v24, %v898_v21  ;;  %v894_v40 = vmul.f32 %v3341_v36, %v842_v30 }
 0x2ce   : > { %v2783_v32 = vpop.f32.mrf.mxu0 }
 0x2cf   : > { %v904_v20 = vpack.c.bf16 %v897_v19, %v896_v28  ;;  %v845_v25 = vadd.f32 %v2783_v32, %v2579_v3  ;;  %v892_v37 = vmul.f32 %v3336_v22, %v834_v29  ;;  %v902_v45 = vmax.f32 %v894_v40, 0.0 }
 0x2d0   : > { %v836_v35 = vpop.f32.mrf.mxu0 }
 0x2d1   : > { %v895_v38 = vmul.f32 %v3339_v33, %v845_v25  ;;  %v837_v39 = vadd.f32 %v2579_v3, %v836_v35  ;;  %2788 = vmatprep.mubr.msk.bf16.mxu1 %vm920_vm4, %v904_v20  ;;  %v900_v43 = vmax.f32 %v892_v37, 0.0  ;;  %v3014_v3 = vld [vmem:[%s3630_s3 + $0x28] sm:$0xff]  }
 0x2d2   : > { %2789 = vmatmul.mubr.msk.bf16.vlgmr.msra.gmra.mxu1 %vm920_vm4, %v905_v34 }
 0x2d3   : > { %v893_v41 = vmul.f32 %v3333_v17, %v837_v39  ;;  %v903_v42 = vmax.f32 %v895_v38, 0.0 }
 0x2d5   : > { %v901_v44 = vmax.f32 %v893_v41, 0.0  ;;  %v907_v47 = vpack.c.bf16 %v903_v42, %v902_v45 }
 0x2d7   : > { %v906_v46 = vpack.c.bf16 %v901_v44, %v900_v43 }
 0x2d9   : > { %2792 = vmatprep.mubr.msk.bf16.mxu1 %vm920_vm4, %v906_v46 }
 0x2da   : > { %2793 = vmatmul.mubr.msk.bf16.gmra.mxu1 %vm920_vm4, %v907_v47 }
 0x2db   : > { %2804 = vmatprep.mubr.msk.bf16.mxu1 %vm3112_vm3, %v3111_v48 }
 0x392   : > { %v2790_v49 = vpop.f32.mrf.mxu1 }
 0x394   : > { %v967_v50 = vpop.f32.mrf.mxu1 }
 0x396   : > { %v2791_v51 = vpop.f32.mrf.mxu1 }
 0x397   : > { %v999_v52 = vpack.c.bf16 %v2791_v51, %v2790_v49 }
 0x398   : > { %v970_v53 = vpop.f32.mrf.mxu1 }
 0x399   : > { %v998_v54 = vpack.c.bf16 %v970_v53, %v967_v50  ;;  %2803 = vmatpush3.bf16.msra.mxu1 %v999_v52 }
 0x39a   : > { %v2794_v55 = vpop.f32.mrf.mxu1  ;;  %2814 = vmatprep.subr.bf16.mxu1 %v3111_v48 }
 0x39b   : > { %2797 = vmatpush3.bf16.msra.mxu0 %v998_v54 }
 0x39c   : > { %v983_v56 = vpop.f32.mrf.mxu1  ;;  %2805 = vmatmul.mubr.msk.bf16.vlgmr.msra.gmra.mxu1 %vm322_vm1, %v3281_v18  ;;  %2808 = vmatprep.subr.bf16.mxu0 %v3111_v48 }
 0x39d   : > { %2816 = vmatprep.mubr.msk.bf16.mxu1 %vm3112_vm3, %v3111_v48 }
 0x39e   : > { %v2795_v57 = vpop.f32.mrf.mxu1  ;;  %2799 = vmatmul.mubr.msk.bf16.vlgmr.msra.gmra.mxu0 %vm322_vm1, %v3271_v10 }
 0x39f   : > { %v1001_v59 = vpack.c.bf16 %v2795_v57, %v2794_v55  ;;  %2810 = vmatprep.mubr.msk.bf16.mxu0 %vm3112_vm3, %v3111_v48 }
 0x3a0   : > { %v986_v60 = vpop.f32.mrf.mxu1 }
 0x3a1   : > { %v1000_v61 = vpack.c.bf16 %v986_v60, %v983_v56  ;;  %2815 = vmatpush3.bf16.msra.mxu1 %v1001_v59  ;;  %v3015_v59 = vld [vmem:[%s3630_s3 + $0x40] sm:$0xff]   ;;  %v3016_v60 = vld [vmem:[%s3630_s3 + $0x38] sm:$0xff]  }
 0x3a2   : > { %2832 = vmatprep.subr.bf16.mxu1 %v3011_v58 }
 0x3a3   : > { %2809 = vmatpush3.bf16.msra.mxu0 %v1000_v61 }
 0x3a4   : > { %2817 = vmatmul.mubr.msk.bf16.vlgmr.msra.gmra.mxu1 %vm322_vm1, %v3295_v31  ;;  %2820 = vmatprep.subr.bf16.mxu0 %v3013_v2 }
 0x3a5   : > { %2833 = vmatpush3.bf16.msra.mxu1 %v3011_v58  ;;  %2836 = vmatprep.mubr.msk.bf16.mxu1 %vm920_vm4, %v904_v20 }
 0x3a6   : > { %2811 = vmatmul.mubr.msk.bf16.vlgmr.msra.gmra.mxu0 %vm322_vm1, %v3289_v27  ;;  %2834 = vmatprep.subr.bf16.mxu1 %v3012_v62 }
 0x3a7   : > { %2821 = vmatpush3.bf16.msra.mxu0 %v3013_v2 }
 0x3a8   : > { %2822 = vmatprep.subr.bf16.mxu0 %v3014_v3 }
 0x3a9   : > { %2835 = vmatpush3.bf16.msra.mxu1 %v3012_v62 }
 0x3aa   : > { %2856 = vmatprep.subr.bf16.mxu1 %v3111_v48 }
 0x3ab   : > { %2823 = vmatpush3.bf16.msra.mxu0 %v3014_v3 }
 0x3ac   : > { %2837 = vmatmul.mubr.msk.bf16.vlgmr.msra.gmra.mxu1 %vm920_vm4, %v905_v34  ;;  %2844 = vmatprep.subr.bf16.mxu0 %v3015_v59 }
 0x3ad   : > { %2840 = vmatprep.mubr.msk.bf16.mxu1 %vm920_vm4, %v906_v46 }
 0x3b4   : > { %2841 = vmatmul.mubr.msk.bf16.gmra.mxu1 %vm920_vm4, %v907_v47 }
 0x3b5   : > { %2858 = vmatprep.mubr.msk.bf16.mxu1 %vm3112_vm3, %v3111_v48 }
 0x45c   : > { %v1077_v5 = vpop.f32.mrf.mxu1 }
 0x45d   : > { %v1172_v14 = vadd.f32 %v2595_v11, %v1077_v5  ;;  %v2608_v5 = vld [vmem:[%s3631_s4 + $0x2] ss:$0 sm:$0xff] }
 0x45e   : > { %v1036_v12 = vpop.f32.mrf.mxu0  ;;  %v2806_v1 = vpop.f32.mrf.mxu1 }
 0x45f   : > { %v1170_v13 = vadd.f32 %v2595_v11, %v1036_v12  ;;  %v1180_v28 = vmul.f32 %v1172_v14, %v3322_v0 }
 0x460   : > { %v2800_v16 = vpop.f32.mrf.mxu0  ;;  %v1080_v7 = vpop.f32.mrf.mxu1 }
 0x461   : > { %v1173_v8 = vadd.f32 %v2595_v11, %v1080_v7  ;;  %v1178_v23 = vmul.f32 %v1170_v13, %v3329_v6  ;;  %v1188_v37 = vmax.f32 %v1180_v28, 0.0 }
 0x462   : > { %v1039_v15 = vpop.f32.mrf.mxu0  ;;  %v2807_v9 = vpop.f32.mrf.mxu1 }
 0x463   : > { %v1181_v24 = vmul.f32 %v1173_v8, %v3327_v4  ;;  %v1171_v26 = vadd.f32 %v2595_v11, %v1039_v15  ;;  %v1186_v25 = vmax.f32 %v1178_v23, 0.0 }
 0x464   : > { %v2801_v19 = vpop.f32.mrf.mxu0  ;;  %v1159_v29 = vpop.f32.mrf.mxu1 }
 0x465   : > { %v1179_v21 = vmul.f32 %v1171_v26, %v3320_v63  ;;  %v1189_v30 = vmax.f32 %v1181_v24, 0.0  ;;  %v1176_v38 = vadd.f32 %v2595_v11, %v1159_v29 }
 0x466   : > { %v1118_v32 = vpop.f32.mrf.mxu0  ;;  %v2818_v20 = vpop.f32.mrf.mxu1 }
 0x467   : > { %v1187_v34 = vmax.f32 %v1179_v21, 0.0  ;;  %v1174_v35 = vadd.f32 %v2595_v11, %v1118_v32  ;;  %v1195_v43 = vpack.c.bf16 %v1189_v30, %v1188_v37  ;;  %v1184_v50 = vmul.f32 %v1176_v38, %v3341_v36 }
 0x468   : > { %v2812_v39 = vpop.f32.mrf.mxu0  ;;  %v1162_v40 = vpop.f32.mrf.mxu1 }
 0x469   : > { %v1194_v41 = vpack.c.bf16 %v1187_v34, %v1186_v25  ;;  %v1177_v42 = vadd.f32 %v2595_v11, %v1162_v40  ;;  %v1182_v46 = vmul.f32 %v1174_v35, %v3336_v22  ;;  %v1192_v56 = vmax.f32 %v1184_v50, 0.0 }
 0x46a   : > { %v1121_v44 = vpop.f32.mrf.mxu0  ;;  %v2819_v45 = vpop.f32.mrf.mxu1 }
 0x46b   : > { %v1185_v47 = vmul.f32 %v1177_v42, %v3339_v33  ;;  %v1175_v49 = vadd.f32 %v2595_v11, %v1121_v44  ;;  %2824 = vmatprep.mubr.msk.bf16.mxu0 %vm920_vm4, %v1194_v41  ;;  %v1190_v54 = vmax.f32 %v1182_v46, 0.0 }
 0x46c   : > { %v2813_v51 = vpop.f32.mrf.mxu0  ;;  %2825 = vmatmul.mubr.msk.bf16.vlgmr.msra.gmra.mxu0 %vm920_vm4, %v1195_v43  ;;  %v2838_v61 = vpop.f32.mrf.mxu1 }
 0x46d   : > { %v1183_v52 = vmul.f32 %v1175_v49, %v3333_v17  ;;  %v1193_v53 = vmax.f32 %v1185_v47, 0.0  ;;  %2845 = vmatpush3.bf16.msra.mxu0 %v3015_v59 }
 0x46e   : > { %2846 = vmatprep.subr.bf16.mxu0 %v3016_v60  ;;  %v1333_v62 = vpop.f32.mrf.mxu1 }
 0x46f   : > { %v1191_v55 = vmax.f32 %v1183_v52, 0.0  ;;  %v1197_v58 = vpack.c.bf16 %v1193_v53, %v1192_v56 }
 0x470   : > { %v2839_v2 = vpop.f32.mrf.mxu1 }
 0x471   : > { %v1196_v57 = vpack.c.bf16 %v1191_v55, %v1190_v54  ;;  %2847 = vmatpush3.bf16.msra.mxu0 %v3016_v60 }
 0x472   : > { %2868 = vmatprep.subr.bf16.mxu0 %v3111_v48  ;;  %v1336_v3 = vpop.f32.mrf.mxu1 }
 0x473   : > { %2828 = vmatprep.mubr.msk.bf16.mxu0 %vm920_vm4, %v1196_v57 }
 0x474   : > { %2829 = vmatmul.mubr.msk.bf16.gmra.mxu0 %vm920_vm4, %v1197_v58  ;;  %v2842_v1 = vpop.f32.mrf.mxu1 }
 0x476   : > { %v1349_v23 = vpop.f32.mrf.mxu1 }
 0x478   : > { %v2843_v20 = vpop.f32.mrf.mxu1 }
 0x47a   : > { %v1352_v46 = vpop.f32.mrf.mxu1 }
 0x52c   : > { %v2826_v11 = vpop.f32.mrf.mxu0 }
 0x52d   : > { %v1342_v12 = vadd.f32 %v2838_v61, %v2826_v11 }
 0x52e   : > { %v1256_v13 = vpop.f32.mrf.mxu0 }
 0x52f   : > { %v1370_v14 = vadd.f32 %v2608_v5, %v1342_v12  ;;  %v1334_v16 = vadd.f32 %v1333_v62, %v1256_v13 }
 0x530   : > { %v2827_v7 = vpop.f32.mrf.mxu0 }
 0x531   : > { %v1378_v8 = vmax.f32 %v1370_v14, 0.0  ;;  %v1368_v15 = vadd.f32 %v2608_v5, %v1334_v16  ;;  %v1345_v9 = vadd.f32 %v2839_v2, %v2827_v7 }
 0x532   : > { %v1259_v24 = vpop.f32.mrf.mxu0 }
 0x533   : > { %v1376_v26 = vmax.f32 %v1368_v15, 0.0  ;;  %v1371_v28 = vadd.f32 %v2608_v5, %v1345_v9  ;;  %v1337_v19 = vadd.f32 %v1336_v3, %v1259_v24  ;;  %v1386_v21 = vmul.f32 %v1378_v8, %v3322_v0 }
 0x534   : > { %v2830_v29 = vpop.f32.mrf.mxu0 }
 0x535   : > { %v1379_v30 = vmax.f32 %v1371_v28, 0.0  ;;  %v1369_v32 = vadd.f32 %v2608_v5, %v1337_v19  ;;  %v1384_v25 = vmul.f32 %v1376_v26, %v3329_v6  ;;  %v1358_v34 = vadd.f32 %v2842_v1, %v2830_v29 }
 0x536   : > { %v1272_v35 = vpop.f32.mrf.mxu0  ;;  %v1401_v42 = vsel %vm920_vm4, %v1386_v21, 0.0 }
 0x537   : > { %v1387_v37 = vmul.f32 %v1379_v30, %v3327_v4  ;;  %v1377_v38 = vmax.f32 %v1369_v32, 0.0  ;;  %v1350_v39 = vadd.f32 %v1349_v23, %v1272_v35  ;;  %v1374_v40 = vadd.f32 %v2608_v5, %v1358_v34 }
 0x538   : > { %v2831_v41 = vpop.f32.mrf.mxu0  ;;  %v1392_v47 = vsel %vm920_vm4, %v1384_v25, 0.0 }
 0x539   : > { %v1402_v43 = vsel %vm920_vm4, %v1387_v37, 0.0  ;;  %v1385_v44 = vmul.f32 %v1377_v38, %v3320_v63  ;;  %v1372_v45 = vadd.f32 %v2608_v5, %v1350_v39  ;;  %v1382_v50 = vmax.f32 %v1374_v40, 0.0 }
 0x53a   : > { %v1403_v49 = vadd.f32 %v1402_v43, %v1401_v42  ;;  %v1361_v51 = vadd.f32 %v2843_v20, %v2831_v41  ;;  %v1275_v52 = vpop.f32.mrf.mxu0  ;;  %v1429_v58 = vpack.c.bf16 %v1387_v37, %v1386_v21 }
 0x53b   : > { %v1393_v53 = vsel %vm920_vm4, %v1385_v44, 0.0  ;;  %v1428_v54 = vpack.c.bf16 %v1385_v44, %v1384_v25  ;;  %v1380_v55 = vmax.f32 %v1372_v45, 0.0  ;;  %v1353_v56 = vadd.f32 %v1352_v46, %v1275_v52 }
 0x53c   : > { %v1404_v57 = vrot.slane %v1403_v49, 4  ;;  %v1394_v59 = vadd.f32 %v1393_v53, %v1392_v47  ;;  %v1375_v60 = vadd.f32 %v2608_v5, %v1361_v51  ;;  %v1390_v3 = vmul.f32 %v1382_v50, %v3341_v36 }
 0x53d   : > { %v1373_v61 = vadd.f32 %v2608_v5, %v1353_v56  ;;  %2848 = vmatprep.mubr.msk.bf16.mxu0 %vm920_vm4, %v1428_v54  ;;  %v1388_v12 = vmul.f32 %v1380_v55, %v3336_v22 }
 0x53e   : > { %v1405_v62 = vadd.f32 %v1404_v57, %v1403_v49  ;;  %v1395_v2 = vrot.slane %v1394_v59, 4  ;;  %v1383_v11 = vmax.f32 %v1375_v60, 0.0  ;;  %2849 = vmatmul.mubr.msk.bf16.vlgmr.msra.gmra.mxu0 %vm920_vm4, %v1429_v58  ;;  %v1419_v15 = vsel %vm920_vm4, %v1390_v3, 0.0 }
 0x53f   : > { %v1381_v1 = vmax.f32 %v1373_v61, 0.0  ;;  %v1410_v23 = vsel %vm920_vm4, %v1388_v12, 0.0 }
 0x540   : > { %v1406_v13 = vrot.slane %v1405_v62, 2  ;;  %v1396_v14 = vadd.f32 %v1395_v2, %v1394_v59  ;;  %v1391_v16 = vmul.f32 %v1383_v11, %v3339_v33 }
 0x541   : > { %v1389_v7 = vmul.f32 %v1381_v1, %v3333_v17 }
 0x542   : > { %v1407_v8 = vadd.f32 %v1406_v13, %v1405_v62  ;;  %v1397_v5 = vrot.slane %v1396_v14, 2  ;;  %v1420_v9 = vsel %vm920_vm4, %v1391_v16, 0.0  ;;  %v1431_v21 = vpack.c.bf16 %v1391_v16, %v1390_v3 }
 0x543   : > { %v1421_v24 = vadd.f32 %v1420_v9, %v1419_v15  ;;  %v1411_v26 = vsel %vm920_vm4, %v1389_v7, 0.0  ;;  %v1430_v28 = vpack.c.bf16 %v1389_v7, %v1388_v12  ;;  %v3017_v7 = vld [vmem:[%s3630_s3 + $0x50] sm:$0xff]  }
 0x544   : > { %v1408_v19 = vrot.slane %v1407_v8, 1  ;;  %v1398_v29 = vadd.f32 %v1397_v5, %v1396_v14  ;;  %v1412_v30 = vadd.f32 %v1411_v26, %v1410_v23  ;;  %v2619_v5 = vld [vmem:[%s3631_s4 + $0x3] ss:$0 sm:$0xff] }
 0x545   : > { %v1422_v32 = vrot.slane %v1421_v24, 4  ;;  %2852 = vmatprep.mubr.msk.bf16.mxu0 %vm920_vm4, %v1430_v28 }
 0x546   : > { %v1409_v20 = vadd.f32 %v1408_v19, %v1407_v8  ;;  %v1399_v25 = vrot.slane %v1398_v29, 1  ;;  %v1413_v34 = vrot.slane %v1412_v30, 4  ;;  %2853 = vmatmul.mubr.msk.bf16.gmra.mxu0 %vm920_vm4, %v1431_v21  ;;  %v3018_v8 = vld [vmem:[%s3630_s3 + $0x48] sm:$0xff]  }
 0x547   : > { %v1423_v35 = vadd.f32 %v1422_v32, %v1421_v24  ;;  %2870 = vmatprep.mubr.msk.bf16.mxu0 %vm3112_vm3, %v3111_v48 }
 0x548   : > { %v2241_v37 = vpack.c.bf16 %v1409_v20, %v1409_v20  ;;  %v1400_v38 = vadd.f32 %v1399_v25, %v1398_v29  ;;  %v1414_v39 = vadd.f32 %v1413_v34, %v1412_v30 }
 0x549   : > { %v1424_v40 = vrot.slane %v1423_v35, 2 }
 0x54a   : > { %v2240_v41 = vpack.c.bf16 %v1400_v38, %v1400_v38  ;;  %v1415_v42 = vrot.slane %v1414_v39, 2  ;;  %v2323_v44 = vunpack.c.l.b16 %v2241_v37 }
 0x54b   : > { %v1425_v43 = vadd.f32 %v1424_v40, %v1423_v35 }
 0x54c   : > { %v2322_v45 = vunpack.c.l.b16 %v2240_v41  ;;  %v1416_v46 = vadd.f32 %v1415_v42, %v1414_v39 }
 0x54d   : > { %v1426_v47 = vrot.slane %v1425_v43, 1 }
 0x54e   : > { %v2326_v49 = vsel %vm2256_vm5, %v2323_v44, %v2322_v45  ;;  %v1417_v50 = vrot.slane %v1416_v46, 1 }
 0x54f   : > { %v1427_v51 = vadd.f32 %v1426_v47, %v1425_v43 }
 0x550   : > { %v1418_v52 = vadd.f32 %v1417_v50, %v1416_v46 }
 0x551   : > { %v2243_v53 = vpack.c.bf16 %v1427_v51, %v1427_v51 }
 0x552   : > { %v2242_v54 = vpack.c.bf16 %v1418_v52, %v1418_v52 }
 0x553   : > { %v2325_v56 = vunpack.c.l.b16 %v2243_v53 }
 0x554   : > { %v2324_v55 = vunpack.c.l.b16 %v2242_v54 }
 0x556   : > { %v2327_v57 = vsel %vm2258_vm6, %v2324_v55, %v2326_v49 }
 0x557   : > { %v3436_v58 = vsel %vm2260_vm7, %v2325_v56, %v2327_v57 }
 0x5fe   : > { %v2850_v59 = vpop.f32.mrf.mxu0 }
 0x600   : > { %v1490_v60 = vpop.f32.mrf.mxu0 }
 0x602   : > { %v2851_v61 = vpop.f32.mrf.mxu0 }
 0x603   : > { %v1522_v12 = vpack.c.bf16 %v2851_v61, %v2850_v59 }
 0x604   : > { %v1493_v62 = vpop.f32.mrf.mxu0 }
 0x605   : > { %v1521_v2 = vpack.c.bf16 %v1493_v62, %v1490_v60 }
 0x606   : > { %v2854_v3 = vpop.f32.mrf.mxu0 }
 0x607   : > { %2857 = vmatpush3.bf16.msra.mxu1 %v1521_v2 }
 0x608   : > { %v1506_v11 = vpop.f32.mrf.mxu0  ;;  %2862 = vmatprep.subr.bf16.mxu1 %v3111_v48 }
 0x60a   : > { %v2855_v1 = vpop.f32.mrf.mxu0  ;;  %2859 = vmatmul.mubr.msk.bf16.vlgmr.msra.gmra.mxu1 %vm322_vm1, %v3271_v10 }
 0x60b   : > { %2863 = vmatpush3.bf16.msra.mxu1 %v1522_v12  ;;  %2864 = vmatprep.mubr.msk.bf16.mxu1 %vm3112_vm3, %v3111_v48  ;;  %v1524_v16 = vpack.c.bf16 %v2855_v1, %v2854_v3 }
 0x60c   : > { %v1509_v13 = vpop.f32.mrf.mxu0  ;;  %2874 = vmatprep.subr.bf16.mxu1 %v3111_v48 }
 0x60d   : > { %v1523_v14 = vpack.c.bf16 %v1509_v13, %v1506_v11 }
 0x60f   : > { %2869 = vmatpush3.bf16.msra.mxu0 %v1523_v14 }
 0x610   : > { %2880 = vmatprep.subr.bf16.mxu0 %v3017_v7 }
 0x612   : > { %2865 = vmatmul.mubr.msk.bf16.vlgmr.msra.gmra.mxu1 %vm322_vm1, %v3281_v18  ;;  %2871 = vmatmul.mubr.msk.bf16.vlgmr.msra.gmra.mxu0 %vm322_vm1, %v3289_v27 }
 0x613   : > { %2875 = vmatpush3.bf16.msra.mxu1 %v1524_v16  ;;  %2876 = vmatprep.mubr.msk.bf16.mxu1 %vm3112_vm3, %v3111_v48 }
 0x614   : > { %2892 = vmatprep.subr.bf16.mxu1 %v3111_v48  ;;  %2881 = vmatpush3.bf16.msra.mxu0 %v3017_v7 }
 0x615   : > { %2882 = vmatprep.subr.bf16.mxu0 %v3018_v8 }
 0x618   : > { %2883 = vmatpush3.bf16.msra.mxu0 %v3018_v8 }
 0x619   : > { %2904 = vmatprep.subr.bf16.mxu0 %v3111_v48 }
 0x61a   : > { %2877 = vmatmul.mubr.msk.bf16.vlgmr.msra.gmra.mxu1 %vm322_vm1, %v3295_v31 }
 0x61b   : > { %2894 = vmatprep.mubr.msk.bf16.mxu1 %vm3112_vm3, %v3111_v48 }
 0x6ca   : > { %v1559_v15 = vpop.f32.mrf.mxu1 }
 0x6cb   : > { %v1693_v9 = vadd.f32 %v2619_v5, %v1559_v15 }
 0x6cc   : > { %v2860_v23 = vpop.f32.mrf.mxu1 }
 0x6cd   : > { %v1701_v26 = vmul.f32 %v1693_v9, %v3329_v6 }
 0x6ce   : > { %v1562_v24 = vpop.f32.mrf.mxu1 }
 0x6cf   : > { %v1694_v28 = vadd.f32 %v2619_v5, %v1562_v24  ;;  %v1709_v32 = vmax.f32 %v1701_v26, 0.0 }
 0x6d0   : > { %v2861_v19 = vpop.f32.mrf.mxu1 }
 0x6d1   : > { %v1702_v29 = vmul.f32 %v1694_v28, %v3320_v63  ;;  %v3019_v28 = vld [vmem:[%s3630_s3 + $0x60] sm:$0xff]  }
 0x6d2   : > { %v1600_v21 = vpop.f32.mrf.mxu1  ;;  %v1641_v30 = vpop.f32.mrf.mxu0 }
 0x6d3   : > { %v1710_v20 = vmax.f32 %v1702_v29, 0.0  ;;  %v1695_v25 = vadd.f32 %v2619_v5, %v1600_v21  ;;  %v1697_v34 = vadd.f32 %v2619_v5, %v1641_v30  ;;  %v3023_v29 = vld [vmem:[%s3630_s3 + $0x70] sm:$0xff]   ;;  %v3024_v21 = vld [vmem:[%s3630_s3 + $0x68] sm:$0xff]  }
 0x6d4   : > { %v2866_v35 = vpop.f32.mrf.mxu1  ;;  %v2872_v37 = vpop.f32.mrf.mxu0 }
 0x6d5   : > { %v1717_v38 = vpack.c.bf16 %v1710_v20, %v1709_v32  ;;  %v1703_v39 = vmul.f32 %v1695_v25, %v3322_v0  ;;  %v1705_v42 = vmul.f32 %v1697_v34, %v3336_v22 }
 0x6d6   : > { %v1603_v40 = vpop.f32.mrf.mxu1  ;;  %v1644_v41 = vpop.f32.mrf.mxu0 }
 0x6d7   : > { %v1696_v43 = vadd.f32 %v2619_v5, %v1603_v40  ;;  %v1698_v44 = vadd.f32 %v2619_v5, %v1644_v41  ;;  %2884 = vmatprep.mubr.msk.bf16.mxu0 %vm920_vm4, %v1717_v38  ;;  %v1711_v50 = vmax.f32 %v1703_v39, 0.0  ;;  %v1713_v52 = vmax.f32 %v1705_v42, 0.0 }
 0x6d8   : > { %v2867_v45 = vpop.f32.mrf.mxu1  ;;  %v2873_v46 = vpop.f32.mrf.mxu0 }
 0x6d9   : > { %v1704_v47 = vmul.f32 %v1696_v43, %v3327_v4  ;;  %v1706_v49 = vmul.f32 %v1698_v44, %v3333_v17 }
 0x6da   : > { %v1682_v51 = vpop.f32.mrf.mxu1 }
 0x6db   : > { %v1712_v53 = vmax.f32 %v1704_v47, 0.0  ;;  %v1714_v54 = vmax.f32 %v1706_v49, 0.0  ;;  %v1699_v55 = vadd.f32 %v2619_v5, %v1682_v51 }
 0x6dc   : > { %v2878_v56 = vpop.f32.mrf.mxu1 }
 0x6dd   : > { %v1718_v57 = vpack.c.bf16 %v1712_v53, %v1711_v50  ;;  %v1719_v59 = vpack.c.bf16 %v1714_v54, %v1713_v52  ;;  %v1707_v61 = vmul.f32 %v1699_v55, %v3341_v36 }
 0x6de   : > { %v1685_v60 = vpop.f32.mrf.mxu1 }
 0x6df   : > { %v1700_v62 = vadd.f32 %v2619_v5, %v1685_v60  ;;  %2885 = vmatmul.mubr.msk.bf16.vlgmr.msra.gmra.mxu0 %vm920_vm4, %v1718_v57  ;;  %v1715_v11 = vmax.f32 %v1707_v61, 0.0 }
 0x6e0   : > { %v2879_v2 = vpop.f32.mrf.mxu1  ;;  %2888 = vmatprep.mubr.msk.bf16.mxu0 %vm920_vm4, %v1719_v59 }
 0x6e1   : > { %v1708_v3 = vmul.f32 %v1700_v62, %v3339_v33 }
 0x6e3   : > { %v1716_v12 = vmax.f32 %v1708_v3, 0.0 }
 0x6e5   : > { %v1720_v1 = vpack.c.bf16 %v1716_v12, %v1715_v11 }
 0x6e7   : > { %2889 = vmatmul.mubr.msk.bf16.gmra.mxu0 %vm920_vm4, %v1720_v1 }
 0x6e8   : > { %2906 = vmatprep.mubr.msk.bf16.mxu0 %vm3112_vm3, %v3111_v48 }
 0x79f   : > { %v2886_v13 = vpop.f32.mrf.mxu0 }
 0x7a1   : > { %v1779_v14 = vpop.f32.mrf.mxu0 }
 0x7a3   : > { %v2887_v16 = vpop.f32.mrf.mxu0 }
 0x7a4   : > { %v1811_v9 = vpack.c.bf16 %v2887_v16, %v2886_v13 }
 0x7a5   : > { %v1782_v7 = vpop.f32.mrf.mxu0 }
 0x7a6   : > { %v1810_v8 = vpack.c.bf16 %v1782_v7, %v1779_v14 }
 0x7a7   : > { %v2890_v5 = vpop.f32.mrf.mxu0 }
 0x7a8   : > { %2893 = vmatpush3.bf16.msra.mxu1 %v1810_v8 }
 0x7a9   : > { %v1795_v15 = vpop.f32.mrf.mxu0  ;;  %2898 = vmatprep.subr.bf16.mxu1 %v3111_v48 }
 0x7ab   : > { %v2891_v23 = vpop.f32.mrf.mxu0  ;;  %2895 = vmatmul.mubr.msk.bf16.vlgmr.msra.gmra.mxu1 %vm322_vm1, %v3271_v10  ;;  %v3020_v10 = vld [vmem:[%s3630_s3 + $0x58] sm:$0xff]  }
 0x7ac   : > { %2899 = vmatpush3.bf16.msra.mxu1 %v1811_v9  ;;  %2900 = vmatprep.mubr.msk.bf16.mxu1 %vm3112_vm3, %v3111_v48  ;;  %v1813_v19 = vpack.c.bf16 %v2891_v23, %v2890_v5 }
 0x7ad   : > { %v1798_v24 = vpop.f32.mrf.mxu0  ;;  %2910 = vmatprep.subr.bf16.mxu1 %v3111_v48 }
 0x7ae   : > { %v1812_v26 = vpack.c.bf16 %v1798_v24, %v1795_v15 }
 0x7b0   : > { %2905 = vmatpush3.bf16.msra.mxu0 %v1812_v26 }
 0x7b1   : > { %2916 = vmatprep.subr.bf16.mxu0 %v3023_v29 }
 0x7b3   : > { %2901 = vmatmul.mubr.msk.bf16.vlgmr.msra.gmra.mxu1 %vm322_vm1, %v3281_v18  ;;  %2907 = vmatmul.mubr.msk.bf16.vlgmr.msra.gmra.mxu0 %vm322_vm1, %v3289_v27  ;;  %v3021_v18 = vld [vmem:[%s3630_s3 + $0x80] sm:$0xff]   ;;  %v3022_v27 = vld [vmem:[%s3630_s3 + $0x78] sm:$0xff]  }
 0x7b4   : > { %2911 = vmatpush3.bf16.msra.mxu1 %v1813_v19  ;;  %2912 = vmatprep.mubr.msk.bf16.mxu1 %vm3112_vm3, %v3111_v48 }
 0x7b5   : > { %2928 = vmatprep.subr.bf16.mxu1 %v3019_v28  ;;  %2917 = vmatpush3.bf16.msra.mxu0 %v3023_v29 }
 0x7b6   : > { %2918 = vmatprep.subr.bf16.mxu0 %v3024_v21 }
 0x7b9   : > { %2919 = vmatpush3.bf16.msra.mxu0 %v3024_v21 }
 0x7ba   : > { %2940 = vmatprep.subr.bf16.mxu0 %v3111_v48 }
 0x7bb   : > { %2913 = vmatmul.mubr.msk.bf16.vlgmr.msra.gmra.mxu1 %vm322_vm1, %v3295_v31  ;;  %v2329_v31 = vpack.c.b16 %v3436_v58, %v3436_v58  ;;  %v2630_v58 = vld [vmem:[%s3631_s4 + $0x4] ss:$0 sm:$0xff] }
 0x7bc   : > { %2929 = vmatpush3.bf16.msra.mxu1 %v3019_v28  ;;  %2932 = vmatprep.mubr.msk.bf16.mxu1 %vm920_vm4, %v1717_v38 }
 0x7bd   : > { %2930 = vmatprep.subr.bf16.mxu1 %v3020_v10 }
 0x7c0   : > { %2931 = vmatpush3.bf16.msra.mxu1 %v3020_v10 }
 0x7c1   : > { %2948 = vmatprep.subr.bf16.mxu1 %v3111_v48 }
 0x7c3   : > { %2933 = vmatmul.mubr.msk.bf16.vlgmr.msra.gmra.mxu1 %vm920_vm4, %v1718_v57 }
 0x7c4   : > { %2936 = vmatprep.mubr.msk.bf16.mxu1 %vm920_vm4, %v1719_v59  ;;  %2949 = vmatpush3.bf16.msra.mxu1 %v3021_v18 }
 0x7c5   : > { %2950 = vmatprep.subr.bf16.mxu1 %v3111_v48 }
 0x7c8   : > { %2951 = vmatpush3.bf16.msra.mxu1 %v3022_v27 }
 0x7cb   : > { %2937 = vmatmul.mubr.msk.bf16.gmra.mxu1 %vm920_vm4, %v1720_v1 }
 0x7cc   : > { %2952 = vmatprep.mubr.msk.bf16.mxu1 %vm3112_vm3, %v3111_v48 }
 0x7d3   : > { %2953 = vmatmul.mubr.msk.bf16.vlgmr.msra.gmra.mxu1 %vm920_vm4, %v2329_v31 }
 0x86b   : > { %v1848_v30 = vpop.f32.mrf.mxu1 }
 0x86c   : > { %v1982_v32 = vadd.f32 %v2630_v58, %v1848_v30 }
 0x86d   : > { %v2896_v20 = vpop.f32.mrf.mxu1 }
 0x86e   : > { %v1990_v34 = vmul.f32 %v1982_v32, %v3329_v6  ;;  %v3025_v32 = vld [vmem:[%s3630_s3 + $0x90] sm:$0xff]   ;;  %v3026_v20 = vld [vmem:[%s3630_s3 + $0x88] sm:$0xff]  }
 0x86f   : > { %v1851_v25 = vpop.f32.mrf.mxu1 }
 0x870   : > { %v1983_v35 = vadd.f32 %v2630_v58, %v1851_v25  ;;  %v1998_v41 = vmax.f32 %v1990_v34, 0.0  ;;  %v2643_v25 = vld [vmem:[%s3631_s4 + $0x5] ss:$0 sm:$0xff] }
 0x871   : > { %v2897_v37 = vpop.f32.mrf.mxu1 }
 0x872   : > { %v1991_v38 = vmul.f32 %v1983_v35, %v3320_v63 }
 0x873   : > { %v1889_v39 = vpop.f32.mrf.mxu1  ;;  %v1930_v40 = vpop.f32.mrf.mxu0 }
 0x874   : > { %v1999_v42 = vmax.f32 %v1991_v38, 0.0  ;;  %v1984_v43 = vadd.f32 %v2630_v58, %v1889_v39  ;;  %v1986_v44 = vadd.f32 %v2630_v58, %v1930_v40 }
 0x875   : > { %v2902_v45 = vpop.f32.mrf.mxu1  ;;  %v2908_v46 = vpop.f32.mrf.mxu0 }
 0x876   : > { %v2006_v47 = vpack.c.bf16 %v1999_v42, %v1998_v41  ;;  %v1992_v49 = vmul.f32 %v1984_v43, %v3322_v0  ;;  %v1994_v52 = vmul.f32 %v1986_v44, %v3336_v22 }
 0x877   : > { %v1892_v50 = vpop.f32.mrf.mxu1  ;;  %v1933_v51 = vpop.f32.mrf.mxu0 }
 0x878   : > { %v1985_v53 = vadd.f32 %v2630_v58, %v1892_v50  ;;  %v1987_v54 = vadd.f32 %v2630_v58, %v1933_v51  ;;  %2920 = vmatprep.mubr.msk.bf16.mxu0 %vm920_vm4, %v2006_v47  ;;  %v2000_v60 = vmax.f32 %v1992_v49, 0.0  ;;  %v2002_v62 = vmax.f32 %v1994_v52, 0.0 }
 0x879   : > { %v2903_v55 = vpop.f32.mrf.mxu1  ;;  %v2909_v56 = vpop.f32.mrf.mxu0 }
 0x87a   : > { %v1993_v57 = vmul.f32 %v1985_v53, %v3327_v4  ;;  %v1995_v59 = vmul.f32 %v1987_v54, %v3333_v17 }
 0x87b   : > { %v1971_v61 = vpop.f32.mrf.mxu1 }
 0x87c   : > { %v2001_v2 = vmax.f32 %v1993_v57, 0.0  ;;  %v2003_v3 = vmax.f32 %v1995_v59, 0.0  ;;  %v1988_v11 = vadd.f32 %v2630_v58, %v1971_v61 }
 0x87d   : > { %v2914_v12 = vpop.f32.mrf.mxu1 }
 0x87e   : > { %v2007_v1 = vpack.c.bf16 %v2001_v2, %v2000_v60  ;;  %v2008_v13 = vpack.c.bf16 %v2003_v3, %v2002_v62  ;;  %v1996_v16 = vmul.f32 %v1988_v11, %v3341_v36 }
 0x87f   : > { %v1974_v14 = vpop.f32.mrf.mxu1 }
 0x880   : > { %v1989_v7 = vadd.f32 %v2630_v58, %v1974_v14  ;;  %2921 = vmatmul.mubr.msk.bf16.vlgmr.msra.gmra.mxu0 %vm920_vm4, %v2007_v1  ;;  %v2004_v9 = vmax.f32 %v1996_v16, 0.0 }
 0x881   : > { %v2915_v8 = vpop.f32.mrf.mxu1  ;;  %2924 = vmatprep.mubr.msk.bf16.mxu0 %vm920_vm4, %v2008_v13  ;;  %2941 = vmatpush3.bf16.msra.mxu0 %v3025_v32 }
 0x882   : > { %v1997_v5 = vmul.f32 %v1989_v7, %v3339_v33  ;;  %2942 = vmatprep.subr.bf16.mxu0 %v3111_v48 }
 0x883   : > { %v2934_v15 = vpop.f32.mrf.mxu1 }
 0x884   : > { %v2005_v23 = vmax.f32 %v1997_v5, 0.0 }
 0x885   : > { %v2145_v24 = vpop.f32.mrf.mxu1  ;;  %2943 = vmatpush3.bf16.msra.mxu0 %v3026_v20 }
 0x886   : > { %v2009_v26 = vpack.c.bf16 %v2005_v23, %v2004_v9  ;;  %2956 = vmatprep.subr.bf16.mxu0 %v3111_v48 }
 0x887   : > { %v2935_v28 = vpop.f32.mrf.mxu1 }
 0x888   : > { %2925 = vmatmul.mubr.msk.bf16.gmra.mxu0 %vm920_vm4, %v2009_v26 }
 0x889   : > { %v2148_v19 = vpop.f32.mrf.mxu1  ;;  %2944 = vmatprep.mubr.msk.bf16.mxu0 %vm3112_vm3, %v3111_v48 }
 0x88b   : > { %v2938_v10 = vpop.f32.mrf.mxu1 }
 0x88d   : > { %v2161_v18 = vpop.f32.mrf.mxu1 }
 0x88f   : > { %v2939_v27 = vpop.f32.mrf.mxu1 }
 0x891   : > { %v2164_v31 = vpop.f32.mrf.mxu1 }
 0x893   : > { %v3540_v29 = vpop.f32.mrf.mxu1 }
 0x895   : > { %v2954_v21 = vpop.f32.mrf.mxu1 }
 0x897   : > { %v2382_v58 = vpop.f32.mrf.mxu1 }
 0x899   : > { %v2955_v30 = vpop.f32.mrf.mxu1 }
 0x940   : > { %v2922_v34 = vpop.f32.mrf.mxu0 }
 0x941   : > { %v2154_v35 = vadd.f32 %v2934_v15, %v2922_v34 }
 0x942   : > { %v2068_v37 = vpop.f32.mrf.mxu0 }
 0x943   : > { %v2182_v38 = vadd.f32 %v2643_v25, %v2154_v35  ;;  %v2146_v39 = vadd.f32 %v2145_v24, %v2068_v37 }
 0x944   : > { %v2923_v40 = vpop.f32.mrf.mxu0 }
 0x945   : > { %v2190_v41 = vmax.f32 %v2182_v38, 0.0  ;;  %v2180_v42 = vadd.f32 %v2643_v25, %v2146_v39  ;;  %v2157_v43 = vadd.f32 %v2935_v28, %v2923_v40 }
 0x946   : > { %v2071_v44 = vpop.f32.mrf.mxu0 }
 0x947   : > { %v2188_v45 = vmax.f32 %v2180_v42, 0.0  ;;  %v2183_v46 = vadd.f32 %v2643_v25, %v2157_v43  ;;  %v2149_v47 = vadd.f32 %v2148_v19, %v2071_v44  ;;  %v2198_v49 = vmul.f32 %v2190_v41, %v3322_v0 }
 0x948   : > { %v2926_v50 = vpop.f32.mrf.mxu0 }
 0x949   : > { %v2191_v51 = vmax.f32 %v2183_v46, 0.0  ;;  %v2181_v52 = vadd.f32 %v2643_v25, %v2149_v47  ;;  %v2196_v53 = vmul.f32 %v2188_v45, %v3329_v6  ;;  %v2170_v54 = vadd.f32 %v2938_v10, %v2926_v50 }
 0x94a   : > { %v2084_v55 = vpop.f32.mrf.mxu0  ;;  %v2213_v60 = vsel %vm920_vm4, %v2198_v49, 0.0 }
 0x94b   : > { %v2199_v56 = vmul.f32 %v2191_v51, %v3327_v4  ;;  %v2189_v57 = vmax.f32 %v2181_v52, 0.0  ;;  %v2162_v59 = vadd.f32 %v2161_v18, %v2084_v55  ;;  %v2186_v61 = vadd.f32 %v2643_v25, %v2170_v54 }
 0x94c   : > { %v2927_v62 = vpop.f32.mrf.mxu0  ;;  %v2204_v12 = vsel %vm920_vm4, %v2196_v53, 0.0 }
 0x94d   : > { %v2214_v2 = vsel %vm920_vm4, %v2199_v56, 0.0  ;;  %v2197_v3 = vmul.f32 %v2189_v57, %v3320_v63  ;;  %v2184_v0 = vadd.f32 %v2643_v25, %v2162_v59  ;;  %v2173_v11 = vadd.f32 %v2939_v27, %v2927_v62 }
 0x94e   : > { %v2215_v1 = vadd.f32 %v2214_v2, %v2213_v60  ;;  %v2194_v6 = vmax.f32 %v2186_v61, 0.0  ;;  %v2087_v13 = vpop.f32.mrf.mxu0  ;;  %v3027_v2 = vld [vmem:[%s3630_s3 + $0xa0] sm:$0xff]  }
 0x94f   : > { %v2205_v14 = vsel %vm920_vm4, %v2197_v3, 0.0  ;;  %v2192_v4 = vmax.f32 %v2184_v0, 0.0  ;;  %v2187_v16 = vadd.f32 %v2643_v25, %v2173_v11  ;;  %v2165_v7 = vadd.f32 %v2164_v31, %v2087_v13  ;;  %v3028_v3 = vld [vmem:[%s3630_s3 + $0x98] sm:$0xff]   ;;  %v2650_v0 = vld [vmem:[%s3631_s4 + $0x6] ss:$0 sm:$0xff] }
 0x950   : > { %v2216_v8 = vrot.slane %v2215_v1, 4  ;;  %v2206_v5 = vadd.f32 %v2205_v14, %v2204_v12  ;;  %v2202_v15 = vmul.f32 %v2194_v6, %v3341_v36 }
 0x951   : > { %v2195_v9 = vmax.f32 %v2187_v16, 0.0  ;;  %v2185_v23 = vadd.f32 %v2643_v25, %v2165_v7  ;;  %v2200_v26 = vmul.f32 %v2192_v4, %v3336_v22 }
 0x952   : > { %v2217_v24 = vadd.f32 %v2216_v8, %v2215_v1  ;;  %v2207_v63 = vrot.slane %v2206_v5, 4  ;;  %v2231_v27 = vsel %vm920_vm4, %v2202_v15, 0.0 }
 0x953   : > { %v2203_v28 = vmul.f32 %v2195_v9, %v3339_v33  ;;  %v2193_v19 = vmax.f32 %v2185_v23, 0.0  ;;  %v2222_v32 = vsel %vm920_vm4, %v2200_v26, 0.0 }
 0x954   : > { %v2218_v10 = vrot.slane %v2217_v24, 2  ;;  %v2208_v18 = vadd.f32 %v2207_v63, %v2206_v5 }
 0x955   : > { %v2232_v21 = vsel %vm920_vm4, %v2203_v28, 0.0  ;;  %v2201_v31 = vmul.f32 %v2193_v19, %v3333_v17 }
 0x956   : > { %v2209_v58 = vrot.slane %v2208_v18, 2  ;;  %v2233_v30 = vadd.f32 %v2232_v21, %v2231_v27  ;;  %v2219_v36 = vadd.f32 %v2218_v10, %v2217_v24 }
 0x957   : > { %v2223_v20 = vsel %vm920_vm4, %v2201_v31, 0.0 }
 0x958   : > { %v2210_v25 = vadd.f32 %v2209_v58, %v2208_v18  ;;  %v2234_v22 = vrot.slane %v2233_v30, 4  ;;  %v2224_v34 = vadd.f32 %v2223_v20, %v2222_v32  ;;  %v2220_v38 = vrot.slane %v2219_v36, 1 }
 0x95a   : > { %v2211_v33 = vrot.slane %v2210_v25, 1  ;;  %v2235_v35 = vadd.f32 %v2234_v22, %v2233_v30  ;;  %v2225_v37 = vrot.slane %v2224_v34, 4  ;;  %v2221_v17 = vadd.f32 %v2220_v38, %v2219_v36 }
 0x95c   : > { %v2236_v39 = vrot.slane %v2235_v35, 2  ;;  %v2226_v40 = vadd.f32 %v2225_v37, %v2224_v34  ;;  %v2212_v41 = vadd.f32 %v2211_v33, %v2210_v25  ;;  %v2245_v50 = vpack.c.bf16 %v2221_v17, %v2221_v17 }
 0x95e   : > { %v2237_v42 = vadd.f32 %v2236_v39, %v2235_v35  ;;  %v2227_v43 = vrot.slane %v2226_v40, 2  ;;  %v2244_v46 = vpack.c.bf16 %v2212_v41, %v2212_v41  ;;  %v2253_v55 = vunpack.c.l.b16 %v2245_v50 }
 0x960   : > { %v2238_v44 = vrot.slane %v2237_v42, 1  ;;  %v2228_v45 = vadd.f32 %v2227_v43, %v2226_v40  ;;  %v2252_v52 = vunpack.c.l.b16 %v2244_v46 }
 0x962   : > { %v2239_v47 = vadd.f32 %v2238_v44, %v2237_v42  ;;  %v2229_v49 = vrot.slane %v2228_v45, 1  ;;  %v2257_v57 = vsel %vm2256_vm5, %v2253_v55, %v2252_v52 }
 0x964   : > { %v2230_v51 = vadd.f32 %v2229_v49, %v2228_v45  ;;  %v2247_v53 = vpack.c.bf16 %v2239_v47, %v2239_v47 }
 0x966   : > { %v2246_v54 = vpack.c.bf16 %v2230_v51, %v2230_v51  ;;  %v2255_v59 = vunpack.c.l.b16 %v2247_v53 }
 0x968   : > { %v2254_v56 = vunpack.c.l.b16 %v2246_v54 }
 0x96a   : > { %v2259_v60 = vsel %vm2258_vm6, %v2254_v56, %v2257_v57 }
 0x96b   : > { %v2261_v61 = vsel %vm2260_vm7, %v2255_v59, %v2259_v60 }
 0x96c   : > { %v2262_v62 = vpack.c.b16 %v2261_v61, %v2261_v61 }
 0x96e   : > { %2945 = vmatmul.mubr.msk.bf16.vlgmr.msra.gmra.mxu0 %vm920_vm4, %v2262_v62 }
 0x96f   : > { %2960 = vmatprep.mubr.msk.bf16.mxu0 %vm3112_vm3, %v3111_v48  ;;  %2957 = vmatpush3.bf16.msra.mxu0 %v3027_v2 }
 0x970   : > { %2958 = vmatprep.subr.bf16.mxu0 %v3111_v48  ;;  %v2651_v48 = vld [vmem:[%s3631_s4 + $0x7] ss:$0 sm:$0xff] }
 0x973   : > { %2959 = vmatpush3.bf16.msra.mxu0 %v3028_v3 }
 0xa2e   : > { %v2312_v11 = vpop.f32.mrf.mxu0 }
 0xa2f   : > { %v2380_v12 = vadd.f32 %v3540_v29, %v2312_v11 }
 0xa30   : > { %v2946_v1 = vpop.f32.mrf.mxu0 }
 0xa31   : > { %v2389_v6 = vadd.f32 %v2650_v0, %v2380_v12 }
 0xa32   : > { %v2315_v13 = vpop.f32.mrf.mxu0 }
 0xa33   : > { %v2390_v14 = vmax.f32 %v2389_v6, 0.0 }
 0xa34   : > { %v2947_v4 = vpop.f32.mrf.mxu0 }
 0xa35   : > { %v2391_v16 = vpack.c.bf16 %v2390_v14, %v2390_v14 }
 0xa37   : > { %2961 = vmatmul.mubr.msk.bf16.vlgmr.msra.gmra.mxu0 %vm920_vm4, %v2391_v16 }
 0xaf7   : > { %v2445_v7 = vpop.f32.mrf.mxu0 }
 0xaf8   : > { %v2446_v8 = vadd.f32 %v2651_v48, %v2445_v7 }
 0xaf9   : > { %v2962_v5 = vpop.f32.mrf.mxu0 }
 0xafa   : > { %v2452_v29 = vsel %vm2451_vm8, %v2446_v8, -inf }
 0xafb   : > { %2453 = vmax.xlane.f32.xlu0 %v2452_v29  ;;  %v2448_v15 = vpop.f32.mrf.mxu0 }
 0xafd   : > { %v2963_v9 = vpop.f32.mrf.mxu0 }
 0xb84   : > { %v2454_v23 = vpop.xlane.xlu0 %2453 }
 0xb85   : > { %v2455_v24 = vsub.f32 %v2446_v8, %v2454_v23 }
 0xb87   : > { %v2456_v63 = vmul.f32 1.442695, %v2455_v24 }
 0xb89   : > { %3045 = vpow2.f32 %v2456_v63 }
 0xb96   : > { %v3046_v26 = vpop.eup %3045 }
 0xb97   : > { %v2458_v28 = vsel %vm2451_vm8, %v3046_v26, 0.0 }
 0xb98   : > { %2459 = vadd.xlane.f32.xlu1 %v2458_v28 }
 0xc21   : > { %v2460_v19 = vpop.xlane.xlu1 %2459 }
 0xc22   : > { %3047 = vrcp.f32 %v2460_v19 }
 0xc2f   : > { %v3048_v10 = vpop.eup %3047 }
 0xc30   : > { %v2462_v18 = vmul.f32 %v3048_v10, %v3046_v26 }
 0xc32   : > { %2463 = vst.msk [vmem:[%s256_s13] sm:$0xf] %vm2451_vm8, %v2462_v18 }
 0xc33   : > { %3062 = shalt.err (!%p3059_p3)
}
 0xc34   : > { %s3063_s6 = scalar_lea.hbm %s2476_s17, 64  ;;  %s3067_s9 = scalar_lea.hbm %s3632_s5, 128 }
 0xc35   : > { %p3064_p4 = scmp.ne.s32.totalorder %s2476_s17, %s3063_s6  ;;  %p3068_p9 = scmp.lt.s32.totalorder %s2476_s17, %s3632_s5 }
 0xc36   : > { %p3069_p10 = scmp.lt.s32.totalorder %s3067_s9, %s3063_s6 }
 0xc37   : > { %p3065_p7 = pnand %p3064_p4, %p3183_p5 }
 0xc38   : > { %p3070_p11 = por %p3069_p10, %p3068_p9 }
 0xc39   : > { %p3066_p8 = pneg %p3065_p7 }
 0xc3b   : > { %p3071_p12 = pnand %p3070_p11, %p3066_p8 }
 0xc3d   : > { %3074 = shalt.err (!%p3071_p12)
}
 0xc3e   : > { %2964 = dma.vmem_to_hbm [thread:$0]  (%p3183_p5), %s2479_s14, 64, %s2476_s17, %s2465_s23  }
 0xc3f PF: > { %p2970_p13 = scmp.ge.s32.totalorder %s3109_s21, 2  ;;  %s2490_s12 = sand.u32 1, %s3097_s18  }
 0xc40   : > { %s2491_s13 = scalar_lea.sflag [#allocation3], %s2490_s12 }
 0xc41   : > { %p2967_p0 = pnand %p2970_p13, %p3187_p6 }
 0xc43   : > { %p2968_p1 = pneg %p2967_p0 }
 0xc45   : > { %3092 = dma.done.wait (%p2968_p1), %s2491_s13, 64  }
 0xc46   : > { %3094 = vsyncadd (%p2968_p1), %s2491_s13, 4294967232  ;;  %p15_p2 = scmp.ge.s32.totalorder %s3170_s24, 4   ;;  %s3635_s18 = smov %s3101_s19 }
 0xc47   : > { %s3636_s19 = smov %s3105_s20  ;;  %s3637_s20 = smov %s3181_s27 }
 0xc48   : > { %s3638_s21 = smov %s3170_s24  ;;  %17 = sbr.rel (!%p15_p2) target bundleno = 3 (0x3), region = 81 }
 0xc4d   :  { %2496 = vsyncpa [#allocation3], 1 }
 0xc4e   :  { %2498 = vsyncpa [#allocation3 + $0x1], 1 }

</bundles_post_ra>
